<compile_context>
chip_gen: v7x
topology: tpu7x:2x2x1
jax: 0.10.0
libtpu: 0.0.40
codegen_flags: <defaults>
</compile_context>

<pallas_src>
import functools

import jax
import jax.numpy as jnp
from jax.experimental import pallas as pl
from jax.experimental.pallas import tpu as pltpu


def _round_up(n: int, m: int) -> int:
    return ((n + m - 1) // m) * m


def _mlp_rows_kernel(w_ref, x_ref, o_ref, *, dims):
    """One batch tile of the MLP in batch-on-lanes layout.

    w_ref : SMEM f32[n_scalars]; per layer a row-major [fan_in + 1, fan_out]
            slab (bias is the last row), layers concatenated.
    x_ref : VMEM (F, TB)  -- features on sublanes, batch on lanes.
    o_ref : VMEM (C, TB)  -- logits, lane-dense output stores.
    """
    # Current activation as a list of (1, TB) lane-dense rows.
    rows = [x_ref[f:f + 1, :] for f in range(x_ref.shape[0])]

    off = 0
    n_layers = len(dims)
    for li, (fan_in, fan_out) in enumerate(dims):
        relu = li < n_layers - 1
        new_rows = []
        for j in range(fan_out):
            # y[j, :] = sum_i w[i, j] * x[i, :] + b[j]
            # SMEM scalar * dense row -> pure VPU MACs, no XLU lane-broadcasts.
            acc = w_ref[off + j] * rows[0]
            for i in range(1, fan_in):
                acc = acc + w_ref[off + i * fan_out + j] * rows[i]
            acc = acc + w_ref[off + fan_in * fan_out + j]          # bias
            new_rows.append(jnp.maximum(acc, 0.0) if relu else acc)
        rows = new_rows
        off += (fan_in + 1) * fan_out

    o_ref[...] = jnp.concatenate(rows, axis=0).astype(o_ref.dtype)


@functools.partial(jax.jit, static_argnames=("max_tile_b", "min_pallas_batch"))
def blob_classifier_forward(x, params, *, max_tile_b=1024, min_pallas_batch=256):
    """Forward pass of BlobClassifier (only_linear=False path).

    Args:
      x: [B, F] float32 input.
      params: dict w1..w4, each [fan_in + 1, fan_out] (bias folded in as the
        last row; weight rows are the transpose of PyTorch's [out, in]).

    Returns:
      [B, C] float32 logits.
    """
    B, F = x.shape
    names = sorted(params)                       # ["w1", "w2", "w3", "w4"]
    weights = [params[n] for n in names]
    dims = tuple((int(w.shape[0]) - 1, int(w.shape[1])) for w in weights)
    C = dims[-1][1]

    # Small batch: launch/DMA-setup overhead dominates, XLA fusion is optimal.
    if B < min_pallas_batch:
        h = x
        for li, w in enumerate(weights):
            h = h @ w[:-1] + w[-1:]
            if li < len(weights) - 1:
                h = jnp.maximum(h, 0.0)
        return h

    # ---- Pallas path: batch-on-lanes, 1-D batch grid ----
    b128 = _round_up(B, 128)
    if b128 >= 256:
        # >= 2 tiles so both v7x TensorCores get work; cap tile size so the
        # per-tile live rows stay near the 64-vreg register file.
        n_tiles = max(2, pl.cdiv(b128, max_tile_b))
    else:
        n_tiles = 1
    tb = _round_up(pl.cdiv(b128, n_tiles), 128)
    b_pad = _round_up(B, tb)                     # multiple of tb (and of 128)

    x_t = x.T                                    # (F, B): batch -> lanes
    if b_pad != B:
        x_t = jnp.pad(x_t, ((0, 0), (0, b_pad - B)))

    # Single flat weight slab -> one SMEM ref instead of 4 VMEM refs.
    flat_w = jnp.concatenate([w.reshape(-1) for w in weights])

    kernel = functools.partial(_mlp_rows_kernel, dims=dims)

    out_t = pl.pallas_call(
        kernel,
        out_shape=jax.ShapeDtypeStruct((C, b_pad), jnp.float32),
        grid=(b_pad // tb,),
        in_specs=[
            pl.BlockSpec(memory_space=pltpu.MemorySpace.SMEM),   # weights+biases
            pl.BlockSpec((F, tb), lambda i: (0, i)),             # x tile
        ],
        out_specs=pl.BlockSpec((C, tb), lambda i: (0, i)),       # lane-dense out
        compiler_params=pltpu.CompilerParams(
            dimension_semantics=("parallel",),   # shard batch tiles across TCs
        ),
    )(flat_w, x_t)

    out = out_t[:, :B].T                         # back to (B, C)
    return out


def init_params(key, input_features, output_features, hidden_units):
    """nn.Linear-style init (U(-1/sqrt(fan_in), +1/sqrt(fan_in))), bias folded
    into the weight as its last row: shape [fan_in + 1, fan_out]."""
    dims = [(input_features, hidden_units),
            (hidden_units, hidden_units),
            (hidden_units, hidden_units),
            (hidden_units, output_features)]
    params = {}
    for i, (fan_in, fan_out) in enumerate(dims, start=1):
        key, kw, kb = jax.random.split(key, 3)
        bound = 1.0 / float(fan_in) ** 0.5
        w = jax.random.uniform(kw, (fan_in, fan_out), jnp.float32,
                               minval=-bound, maxval=bound)
        b = jax.random.uniform(kb, (1, fan_out), jnp.float32,
                               minval=-bound, maxval=bound)
        params[f"w{i}"] = jnp.concatenate([w, b], axis=0)
    return params


if __name__ == "__main__":
    # Blob-classification shapes: 2 input features, 4 classes, 8 hidden units.
    # Batch 1000 -> padded to 1024 -> two 512-lane tiles (exercises the grid,
    # the "parallel" axis, and the padding slice-off).
    INPUT_FEATURES = 2
    OUTPUT_FEATURES = 4
    HIDDEN_UNITS = 8
    BATCH = 1000

    key = jax.random.PRNGKey(0)
    key, xkey = jax.random.split(key)

    x = jax.random.normal(xkey, (BATCH, INPUT_FEATURES), jnp.float32)
    params = init_params(key, INPUT_FEATURES, OUTPUT_FEATURES, HIDDEN_UNITS)

    logits = blob_classifier_forward(x, params)
    jax.block_until_ready(logits)

    # Plain-JAX reference of the same MLP (bias = last weight row).
    def ref_forward(x, params):
        h = x
        for name in ("w1", "w2", "w3"):
            w = params[name]
            h = jnp.maximum(h @ w[:-1] + w[-1:], 0.0)
        w = params["w4"]
        return h @ w[:-1] + w[-1:]

    ref = ref_forward(x, params)
    assert logits.shape == (BATCH, OUTPUT_FEATURES)
    max_err = float(jnp.max(jnp.abs(logits - ref)))
    assert jnp.allclose(logits, ref, atol=1e-4, rtol=1e-4), f"max_err={max_err}"

    print("KERNEL_OK")
</pallas_src>

<mosaic_0001>
module attributes {stable_mosaic.version = 11 : i64} {
  func.func @_mlp_rows_kernel(%arg0: i32, %arg1: memref<204xf32, #tpu.memory_space<smem>>, %arg2: memref<2x512xf32, #tpu.memory_space<vmem>>, %arg3: memref<4x512xf32, #tpu.memory_space<vmem>>) attributes {dimension_semantics = [#tpu.dimension_semantics<parallel>], iteration_bounds = array<i64: 2>, scalar_prefetch = 0 : i64, scratch_operands = 0 : i64, tpu.core_type = #tpu.core_type<tc>, window_params = [{transform_indices = @transform_0, window_bounds = array<i64: 204>}, {transform_indices = @transform_1, window_bounds = array<i64: 2, 512>}, {transform_indices = @transform_2, window_bounds = array<i64: 4, 512>}]} {
    %c0 = arith.constant 0 : index
    %c0_0 = arith.constant 0 : index
    %0 = vector.load %arg2[%c0, %c0_0] : memref<2x512xf32, #tpu.memory_space<vmem>>, vector<1x512xf32>
    %c1 = arith.constant 1 : index
    %c0_1 = arith.constant 0 : index
    %1 = vector.load %arg2[%c1, %c0_1] : memref<2x512xf32, #tpu.memory_space<vmem>>, vector<1x512xf32>
    %c0_2 = arith.constant 0 : index
    %2 = memref.load %arg1[%c0_2] : memref<204xf32, #tpu.memory_space<smem>>
    %3 = vector.broadcast %2 : f32 to vector<1x512xf32>
    %4 = arith.mulf %3, %0 : vector<1x512xf32>
    %c8 = arith.constant 8 : index
    %5 = memref.load %arg1[%c8] : memref<204xf32, #tpu.memory_space<smem>>
    %6 = vector.broadcast %5 : f32 to vector<1x512xf32>
    %7 = arith.mulf %6, %1 : vector<1x512xf32>
    %8 = arith.addf %4, %7 : vector<1x512xf32>
    %c16 = arith.constant 16 : index
    %9 = memref.load %arg1[%c16] : memref<204xf32, #tpu.memory_space<smem>>
    %10 = vector.broadcast %9 : f32 to vector<1x512xf32>
    %11 = arith.addf %8, %10 : vector<1x512xf32>
    %cst = arith.constant 0.000000e+00 : f32
    %12 = vector.broadcast %cst : f32 to vector<1x512xf32>
    %13 = arith.maximumf %11, %12 : vector<1x512xf32>
    %c1_3 = arith.constant 1 : index
    %14 = memref.load %arg1[%c1_3] : memref<204xf32, #tpu.memory_space<smem>>
    %15 = vector.broadcast %14 : f32 to vector<1x512xf32>
    %16 = arith.mulf %15, %0 : vector<1x512xf32>
    %c9 = arith.constant 9 : index
    %17 = memref.load %arg1[%c9] : memref<204xf32, #tpu.memory_space<smem>>
    %18 = vector.broadcast %17 : f32 to vector<1x512xf32>
    %19 = arith.mulf %18, %1 : vector<1x512xf32>
    %20 = arith.addf %16, %19 : vector<1x512xf32>
    %c17 = arith.constant 17 : index
    %21 = memref.load %arg1[%c17] : memref<204xf32, #tpu.memory_space<smem>>
    %22 = vector.broadcast %21 : f32 to vector<1x512xf32>
    %23 = arith.addf %20, %22 : vector<1x512xf32>
    %cst_4 = arith.constant 0.000000e+00 : f32
    %24 = vector.broadcast %cst_4 : f32 to vector<1x512xf32>
    %25 = arith.maximumf %23, %24 : vector<1x512xf32>
    %c2 = arith.constant 2 : index
    %26 = memref.load %arg1[%c2] : memref<204xf32, #tpu.memory_space<smem>>
    %27 = vector.broadcast %26 : f32 to vector<1x512xf32>
    %28 = arith.mulf %27, %0 : vector<1x512xf32>
    %c10 = arith.constant 10 : index
    %29 = memref.load %arg1[%c10] : memref<204xf32, #tpu.memory_space<smem>>
    %30 = vector.broadcast %29 : f32 to vector<1x512xf32>
    %31 = arith.mulf %30, %1 : vector<1x512xf32>
    %32 = arith.addf %28, %31 : vector<1x512xf32>
    %c18 = arith.constant 18 : index
    %33 = memref.load %arg1[%c18] : memref<204xf32, #tpu.memory_space<smem>>
    %34 = vector.broadcast %33 : f32 to vector<1x512xf32>
    %35 = arith.addf %32, %34 : vector<1x512xf32>
    %cst_5 = arith.constant 0.000000e+00 : f32
    %36 = vector.broadcast %cst_5 : f32 to vector<1x512xf32>
    %37 = arith.maximumf %35, %36 : vector<1x512xf32>
    %c3 = arith.constant 3 : index
    %38 = memref.load %arg1[%c3] : memref<204xf32, #tpu.memory_space<smem>>
    %39 = vector.broadcast %38 : f32 to vector<1x512xf32>
    %40 = arith.mulf %39, %0 : vector<1x512xf32>
    %c11 = arith.constant 11 : index
    %41 = memref.load %arg1[%c11] : memref<204xf32, #tpu.memory_space<smem>>
    %42 = vector.broadcast %41 : f32 to vector<1x512xf32>
    %43 = arith.mulf %42, %1 : vector<1x512xf32>
    %44 = arith.addf %40, %43 : vector<1x512xf32>
    %c19 = arith.constant 19 : index
    %45 = memref.load %arg1[%c19] : memref<204xf32, #tpu.memory_space<smem>>
    %46 = vector.broadcast %45 : f32 to vector<1x512xf32>
    %47 = arith.addf %44, %46 : vector<1x512xf32>
    %cst_6 = arith.constant 0.000000e+00 : f32
    %48 = vector.broadcast %cst_6 : f32 to vector<1x512xf32>
    %49 = arith.maximumf %47, %48 : vector<1x512xf32>
    %c4 = arith.constant 4 : index
    %50 = memref.load %arg1[%c4] : memref<204xf32, #tpu.memory_space<smem>>
    %51 = vector.broadcast %50 : f32 to vector<1x512xf32>
    %52 = arith.mulf %51, %0 : vector<1x512xf32>
    %c12 = arith.constant 12 : index
    %53 = memref.load %arg1[%c12] : memref<204xf32, #tpu.memory_space<smem>>
    %54 = vector.broadcast %53 : f32 to vector<1x512xf32>
    %55 = arith.mulf %54, %1 : vector<1x512xf32>
    %56 = arith.addf %52, %55 : vector<1x512xf32>
    %c20 = arith.constant 20 : index
    %57 = memref.load %arg1[%c20] : memref<204xf32, #tpu.memory_space<smem>>
    %58 = vector.broadcast %57 : f32 to vector<1x512xf32>
    %59 = arith.addf %56, %58 : vector<1x512xf32>
    %cst_7 = arith.constant 0.000000e+00 : f32
    %60 = vector.broadcast %cst_7 : f32 to vector<1x512xf32>
    %61 = arith.maximumf %59, %60 : vector<1x512xf32>
    %c5 = arith.constant 5 : index
    %62 = memref.load %arg1[%c5] : memref<204xf32, #tpu.memory_space<smem>>
    %63 = vector.broadcast %62 : f32 to vector<1x512xf32>
    %64 = arith.mulf %63, %0 : vector<1x512xf32>
    %c13 = arith.constant 13 : index
    %65 = memref.load %arg1[%c13] : memref<204xf32, #tpu.memory_space<smem>>
    %66 = vector.broadcast %65 : f32 to vector<1x512xf32>
    %67 = arith.mulf %66, %1 : vector<1x512xf32>
    %68 = arith.addf %64, %67 : vector<1x512xf32>
    %c21 = arith.constant 21 : index
    %69 = memref.load %arg1[%c21] : memref<204xf32, #tpu.memory_space<smem>>
    %70 = vector.broadcast %69 : f32 to vector<1x512xf32>
    %71 = arith.addf %68, %70 : vector<1x512xf32>
    %cst_8 = arith.constant 0.000000e+00 : f32
    %72 = vector.broadcast %cst_8 : f32 to vector<1x512xf32>
    %73 = arith.maximumf %71, %72 : vector<1x512xf32>
    %c6 = arith.constant 6 : index
    %74 = memref.load %arg1[%c6] : memref<204xf32, #tpu.memory_space<smem>>
    %75 = vector.broadcast %74 : f32 to vector<1x512xf32>
    %76 = arith.mulf %75, %0 : vector<1x512xf32>
    %c14 = arith.constant 14 : index
    %77 = memref.load %arg1[%c14] : memref<204xf32, #tpu.memory_space<smem>>
    %78 = vector.broadcast %77 : f32 to vector<1x512xf32>
    %79 = arith.mulf %78, %1 : vector<1x512xf32>
    %80 = arith.addf %76, %79 : vector<1x512xf32>
    %c22 = arith.constant 22 : index
    %81 = memref.load %arg1[%c22] : memref<204xf32, #tpu.memory_space<smem>>
    %82 = vector.broadcast %81 : f32 to vector<1x512xf32>
    %83 = arith.addf %80, %82 : vector<1x512xf32>
    %cst_9 = arith.constant 0.000000e+00 : f32
    %84 = vector.broadcast %cst_9 : f32 to vector<1x512xf32>
    %85 = arith.maximumf %83, %84 : vector<1x512xf32>
    %c7 = arith.constant 7 : index
    %86 = memref.load %arg1[%c7] : memref<204xf32, #tpu.memory_space<smem>>
    %87 = vector.broadcast %86 : f32 to vector<1x512xf32>
    %88 = arith.mulf %87, %0 : vector<1x512xf32>
    %c15 = arith.constant 15 : index
    %89 = memref.load %arg1[%c15] : memref<204xf32, #tpu.memory_space<smem>>
    %90 = vector.broadcast %89 : f32 to vector<1x512xf32>
    %91 = arith.mulf %90, %1 : vector<1x512xf32>
    %92 = arith.addf %88, %91 : vector<1x512xf32>
    %c23 = arith.constant 23 : index
    %93 = memref.load %arg1[%c23] : memref<204xf32, #tpu.memory_space<smem>>
    %94 = vector.broadcast %93 : f32 to vector<1x512xf32>
    %95 = arith.addf %92, %94 : vector<1x512xf32>
    %cst_10 = arith.constant 0.000000e+00 : f32
    %96 = vector.broadcast %cst_10 : f32 to vector<1x512xf32>
    %97 = arith.maximumf %95, %96 : vector<1x512xf32>
    %c24 = arith.constant 24 : index
    %98 = memref.load %arg1[%c24] : memref<204xf32, #tpu.memory_space<smem>>
    %99 = vector.broadcast %98 : f32 to vector<1x512xf32>
    %100 = arith.mulf %99, %13 : vector<1x512xf32>
    %c32 = arith.constant 32 : index
    %101 = memref.load %arg1[%c32] : memref<204xf32, #tpu.memory_space<smem>>
    %102 = vector.broadcast %101 : f32 to vector<1x512xf32>
    %103 = arith.mulf %102, %25 : vector<1x512xf32>
    %104 = arith.addf %100, %103 : vector<1x512xf32>
    %c40 = arith.constant 40 : index
    %105 = memref.load %arg1[%c40] : memref<204xf32, #tpu.memory_space<smem>>
    %106 = vector.broadcast %105 : f32 to vector<1x512xf32>
    %107 = arith.mulf %106, %37 : vector<1x512xf32>
    %108 = arith.addf %104, %107 : vector<1x512xf32>
    %c48 = arith.constant 48 : index
    %109 = memref.load %arg1[%c48] : memref<204xf32, #tpu.memory_space<smem>>
    %110 = vector.broadcast %109 : f32 to vector<1x512xf32>
    %111 = arith.mulf %110, %49 : vector<1x512xf32>
    %112 = arith.addf %108, %111 : vector<1x512xf32>
    %c56 = arith.constant 56 : index
    %113 = memref.load %arg1[%c56] : memref<204xf32, #tpu.memory_space<smem>>
    %114 = vector.broadcast %113 : f32 to vector<1x512xf32>
    %115 = arith.mulf %114, %61 : vector<1x512xf32>
    %116 = arith.addf %112, %115 : vector<1x512xf32>
    %c64 = arith.constant 64 : index
    %117 = memref.load %arg1[%c64] : memref<204xf32, #tpu.memory_space<smem>>
    %118 = vector.broadcast %117 : f32 to vector<1x512xf32>
    %119 = arith.mulf %118, %73 : vector<1x512xf32>
    %120 = arith.addf %116, %119 : vector<1x512xf32>
    %c72 = arith.constant 72 : index
    %121 = memref.load %arg1[%c72] : memref<204xf32, #tpu.memory_space<smem>>
    %122 = vector.broadcast %121 : f32 to vector<1x512xf32>
    %123 = arith.mulf %122, %85 : vector<1x512xf32>
    %124 = arith.addf %120, %123 : vector<1x512xf32>
    %c80 = arith.constant 80 : index
    %125 = memref.load %arg1[%c80] : memref<204xf32, #tpu.memory_space<smem>>
    %126 = vector.broadcast %125 : f32 to vector<1x512xf32>
    %127 = arith.mulf %126, %97 : vector<1x512xf32>
    %128 = arith.addf %124, %127 : vector<1x512xf32>
    %c88 = arith.constant 88 : index
    %129 = memref.load %arg1[%c88] : memref<204xf32, #tpu.memory_space<smem>>
    %130 = vector.broadcast %129 : f32 to vector<1x512xf32>
    %131 = arith.addf %128, %130 : vector<1x512xf32>
    %cst_11 = arith.constant 0.000000e+00 : f32
    %132 = vector.broadcast %cst_11 : f32 to vector<1x512xf32>
    %133 = arith.maximumf %131, %132 : vector<1x512xf32>
    %c25 = arith.constant 25 : index
    %134 = memref.load %arg1[%c25] : memref<204xf32, #tpu.memory_space<smem>>
    %135 = vector.broadcast %134 : f32 to vector<1x512xf32>
    %136 = arith.mulf %135, %13 : vector<1x512xf32>
    %c33 = arith.constant 33 : index
    %137 = memref.load %arg1[%c33] : memref<204xf32, #tpu.memory_space<smem>>
    %138 = vector.broadcast %137 : f32 to vector<1x512xf32>
    %139 = arith.mulf %138, %25 : vector<1x512xf32>
    %140 = arith.addf %136, %139 : vector<1x512xf32>
    %c41 = arith.constant 41 : index
    %141 = memref.load %arg1[%c41] : memref<204xf32, #tpu.memory_space<smem>>
    %142 = vector.broadcast %141 : f32 to vector<1x512xf32>
    %143 = arith.mulf %142, %37 : vector<1x512xf32>
    %144 = arith.addf %140, %143 : vector<1x512xf32>
    %c49 = arith.constant 49 : index
    %145 = memref.load %arg1[%c49] : memref<204xf32, #tpu.memory_space<smem>>
    %146 = vector.broadcast %145 : f32 to vector<1x512xf32>
    %147 = arith.mulf %146, %49 : vector<1x512xf32>
    %148 = arith.addf %144, %147 : vector<1x512xf32>
    %c57 = arith.constant 57 : index
    %149 = memref.load %arg1[%c57] : memref<204xf32, #tpu.memory_space<smem>>
    %150 = vector.broadcast %149 : f32 to vector<1x512xf32>
    %151 = arith.mulf %150, %61 : vector<1x512xf32>
    %152 = arith.addf %148, %151 : vector<1x512xf32>
    %c65 = arith.constant 65 : index
    %153 = memref.load %arg1[%c65] : memref<204xf32, #tpu.memory_space<smem>>
    %154 = vector.broadcast %153 : f32 to vector<1x512xf32>
    %155 = arith.mulf %154, %73 : vector<1x512xf32>
    %156 = arith.addf %152, %155 : vector<1x512xf32>
    %c73 = arith.constant 73 : index
    %157 = memref.load %arg1[%c73] : memref<204xf32, #tpu.memory_space<smem>>
    %158 = vector.broadcast %157 : f32 to vector<1x512xf32>
    %159 = arith.mulf %158, %85 : vector<1x512xf32>
    %160 = arith.addf %156, %159 : vector<1x512xf32>
    %c81 = arith.constant 81 : index
    %161 = memref.load %arg1[%c81] : memref<204xf32, #tpu.memory_space<smem>>
    %162 = vector.broadcast %161 : f32 to vector<1x512xf32>
    %163 = arith.mulf %162, %97 : vector<1x512xf32>
    %164 = arith.addf %160, %163 : vector<1x512xf32>
    %c89 = arith.constant 89 : index
    %165 = memref.load %arg1[%c89] : memref<204xf32, #tpu.memory_space<smem>>
    %166 = vector.broadcast %165 : f32 to vector<1x512xf32>
    %167 = arith.addf %164, %166 : vector<1x512xf32>
    %cst_12 = arith.constant 0.000000e+00 : f32
    %168 = vector.broadcast %cst_12 : f32 to vector<1x512xf32>
    %169 = arith.maximumf %167, %168 : vector<1x512xf32>
    %c26 = arith.constant 26 : index
    %170 = memref.load %arg1[%c26] : memref<204xf32, #tpu.memory_space<smem>>
    %171 = vector.broadcast %170 : f32 to vector<1x512xf32>
    %172 = arith.mulf %171, %13 : vector<1x512xf32>
    %c34 = arith.constant 34 : index
    %173 = memref.load %arg1[%c34] : memref<204xf32, #tpu.memory_space<smem>>
    %174 = vector.broadcast %173 : f32 to vector<1x512xf32>
    %175 = arith.mulf %174, %25 : vector<1x512xf32>
    %176 = arith.addf %172, %175 : vector<1x512xf32>
    %c42 = arith.constant 42 : index
    %177 = memref.load %arg1[%c42] : memref<204xf32, #tpu.memory_space<smem>>
    %178 = vector.broadcast %177 : f32 to vector<1x512xf32>
    %179 = arith.mulf %178, %37 : vector<1x512xf32>
    %180 = arith.addf %176, %179 : vector<1x512xf32>
    %c50 = arith.constant 50 : index
    %181 = memref.load %arg1[%c50] : memref<204xf32, #tpu.memory_space<smem>>
    %182 = vector.broadcast %181 : f32 to vector<1x512xf32>
    %183 = arith.mulf %182, %49 : vector<1x512xf32>
    %184 = arith.addf %180, %183 : vector<1x512xf32>
    %c58 = arith.constant 58 : index
    %185 = memref.load %arg1[%c58] : memref<204xf32, #tpu.memory_space<smem>>
    %186 = vector.broadcast %185 : f32 to vector<1x512xf32>
    %187 = arith.mulf %186, %61 : vector<1x512xf32>
    %188 = arith.addf %184, %187 : vector<1x512xf32>
    %c66 = arith.constant 66 : index
    %189 = memref.load %arg1[%c66] : memref<204xf32, #tpu.memory_space<smem>>
    %190 = vector.broadcast %189 : f32 to vector<1x512xf32>
    %191 = arith.mulf %190, %73 : vector<1x512xf32>
    %192 = arith.addf %188, %191 : vector<1x512xf32>
    %c74 = arith.constant 74 : index
    %193 = memref.load %arg1[%c74] : memref<204xf32, #tpu.memory_space<smem>>
    %194 = vector.broadcast %193 : f32 to vector<1x512xf32>
    %195 = arith.mulf %194, %85 : vector<1x512xf32>
    %196 = arith.addf %192, %195 : vector<1x512xf32>
    %c82 = arith.constant 82 : index
    %197 = memref.load %arg1[%c82] : memref<204xf32, #tpu.memory_space<smem>>
    %198 = vector.broadcast %197 : f32 to vector<1x512xf32>
    %199 = arith.mulf %198, %97 : vector<1x512xf32>
    %200 = arith.addf %196, %199 : vector<1x512xf32>
    %c90 = arith.constant 90 : index
    %201 = memref.load %arg1[%c90] : memref<204xf32, #tpu.memory_space<smem>>
    %202 = vector.broadcast %201 : f32 to vector<1x512xf32>
    %203 = arith.addf %200, %202 : vector<1x512xf32>
    %cst_13 = arith.constant 0.000000e+00 : f32
    %204 = vector.broadcast %cst_13 : f32 to vector<1x512xf32>
    %205 = arith.maximumf %203, %204 : vector<1x512xf32>
    %c27 = arith.constant 27 : index
    %206 = memref.load %arg1[%c27] : memref<204xf32, #tpu.memory_space<smem>>
    %207 = vector.broadcast %206 : f32 to vector<1x512xf32>
    %208 = arith.mulf %207, %13 : vector<1x512xf32>
    %c35 = arith.constant 35 : index
    %209 = memref.load %arg1[%c35] : memref<204xf32, #tpu.memory_space<smem>>
    %210 = vector.broadcast %209 : f32 to vector<1x512xf32>
    %211 = arith.mulf %210, %25 : vector<1x512xf32>
    %212 = arith.addf %208, %211 : vector<1x512xf32>
    %c43 = arith.constant 43 : index
    %213 = memref.load %arg1[%c43] : memref<204xf32, #tpu.memory_space<smem>>
    %214 = vector.broadcast %213 : f32 to vector<1x512xf32>
    %215 = arith.mulf %214, %37 : vector<1x512xf32>
    %216 = arith.addf %212, %215 : vector<1x512xf32>
    %c51 = arith.constant 51 : index
    %217 = memref.load %arg1[%c51] : memref<204xf32, #tpu.memory_space<smem>>
    %218 = vector.broadcast %217 : f32 to vector<1x512xf32>
    %219 = arith.mulf %218, %49 : vector<1x512xf32>
    %220 = arith.addf %216, %219 : vector<1x512xf32>
    %c59 = arith.constant 59 : index
    %221 = memref.load %arg1[%c59] : memref<204xf32, #tpu.memory_space<smem>>
    %222 = vector.broadcast %221 : f32 to vector<1x512xf32>
    %223 = arith.mulf %222, %61 : vector<1x512xf32>
    %224 = arith.addf %220, %223 : vector<1x512xf32>
    %c67 = arith.constant 67 : index
    %225 = memref.load %arg1[%c67] : memref<204xf32, #tpu.memory_space<smem>>
    %226 = vector.broadcast %225 : f32 to vector<1x512xf32>
    %227 = arith.mulf %226, %73 : vector<1x512xf32>
    %228 = arith.addf %224, %227 : vector<1x512xf32>
    %c75 = arith.constant 75 : index
    %229 = memref.load %arg1[%c75] : memref<204xf32, #tpu.memory_space<smem>>
    %230 = vector.broadcast %229 : f32 to vector<1x512xf32>
    %231 = arith.mulf %230, %85 : vector<1x512xf32>
    %232 = arith.addf %228, %231 : vector<1x512xf32>
    %c83 = arith.constant 83 : index
    %233 = memref.load %arg1[%c83] : memref<204xf32, #tpu.memory_space<smem>>
    %234 = vector.broadcast %233 : f32 to vector<1x512xf32>
    %235 = arith.mulf %234, %97 : vector<1x512xf32>
    %236 = arith.addf %232, %235 : vector<1x512xf32>
    %c91 = arith.constant 91 : index
    %237 = memref.load %arg1[%c91] : memref<204xf32, #tpu.memory_space<smem>>
    %238 = vector.broadcast %237 : f32 to vector<1x512xf32>
    %239 = arith.addf %236, %238 : vector<1x512xf32>
    %cst_14 = arith.constant 0.000000e+00 : f32
    %240 = vector.broadcast %cst_14 : f32 to vector<1x512xf32>
    %241 = arith.maximumf %239, %240 : vector<1x512xf32>
    %c28 = arith.constant 28 : index
    %242 = memref.load %arg1[%c28] : memref<204xf32, #tpu.memory_space<smem>>
    %243 = vector.broadcast %242 : f32 to vector<1x512xf32>
    %244 = arith.mulf %243, %13 : vector<1x512xf32>
    %c36 = arith.constant 36 : index
    %245 = memref.load %arg1[%c36] : memref<204xf32, #tpu.memory_space<smem>>
    %246 = vector.broadcast %245 : f32 to vector<1x512xf32>
    %247 = arith.mulf %246, %25 : vector<1x512xf32>
    %248 = arith.addf %244, %247 : vector<1x512xf32>
    %c44 = arith.constant 44 : index
    %249 = memref.load %arg1[%c44] : memref<204xf32, #tpu.memory_space<smem>>
    %250 = vector.broadcast %249 : f32 to vector<1x512xf32>
    %251 = arith.mulf %250, %37 : vector<1x512xf32>
    %252 = arith.addf %248, %251 : vector<1x512xf32>
    %c52 = arith.constant 52 : index
    %253 = memref.load %arg1[%c52] : memref<204xf32, #tpu.memory_space<smem>>
    %254 = vector.broadcast %253 : f32 to vector<1x512xf32>
    %255 = arith.mulf %254, %49 : vector<1x512xf32>
    %256 = arith.addf %252, %255 : vector<1x512xf32>
    %c60 = arith.constant 60 : index
    %257 = memref.load %arg1[%c60] : memref<204xf32, #tpu.memory_space<smem>>
    %258 = vector.broadcast %257 : f32 to vector<1x512xf32>
    %259 = arith.mulf %258, %61 : vector<1x512xf32>
    %260 = arith.addf %256, %259 : vector<1x512xf32>
    %c68 = arith.constant 68 : index
    %261 = memref.load %arg1[%c68] : memref<204xf32, #tpu.memory_space<smem>>
    %262 = vector.broadcast %261 : f32 to vector<1x512xf32>
    %263 = arith.mulf %262, %73 : vector<1x512xf32>
    %264 = arith.addf %260, %263 : vector<1x512xf32>
    %c76 = arith.constant 76 : index
    %265 = memref.load %arg1[%c76] : memref<204xf32, #tpu.memory_space<smem>>
    %266 = vector.broadcast %265 : f32 to vector<1x512xf32>
    %267 = arith.mulf %266, %85 : vector<1x512xf32>
    %268 = arith.addf %264, %267 : vector<1x512xf32>
    %c84 = arith.constant 84 : index
    %269 = memref.load %arg1[%c84] : memref<204xf32, #tpu.memory_space<smem>>
    %270 = vector.broadcast %269 : f32 to vector<1x512xf32>
    %271 = arith.mulf %270, %97 : vector<1x512xf32>
    %272 = arith.addf %268, %271 : vector<1x512xf32>
    %c92 = arith.constant 92 : index
    %273 = memref.load %arg1[%c92] : memref<204xf32, #tpu.memory_space<smem>>
    %274 = vector.broadcast %273 : f32 to vector<1x512xf32>
    %275 = arith.addf %272, %274 : vector<1x512xf32>
    %cst_15 = arith.constant 0.000000e+00 : f32
    %276 = vector.broadcast %cst_15 : f32 to vector<1x512xf32>
    %277 = arith.maximumf %275, %276 : vector<1x512xf32>
    %c29 = arith.constant 29 : index
    %278 = memref.load %arg1[%c29] : memref<204xf32, #tpu.memory_space<smem>>
    %279 = vector.broadcast %278 : f32 to vector<1x512xf32>
    %280 = arith.mulf %279, %13 : vector<1x512xf32>
    %c37 = arith.constant 37 : index
    %281 = memref.load %arg1[%c37] : memref<204xf32, #tpu.memory_space<smem>>
    %282 = vector.broadcast %281 : f32 to vector<1x512xf32>
    %283 = arith.mulf %282, %25 : vector<1x512xf32>
    %284 = arith.addf %280, %283 : vector<1x512xf32>
    %c45 = arith.constant 45 : index
    %285 = memref.load %arg1[%c45] : memref<204xf32, #tpu.memory_space<smem>>
    %286 = vector.broadcast %285 : f32 to vector<1x512xf32>
    %287 = arith.mulf %286, %37 : vector<1x512xf32>
    %288 = arith.addf %284, %287 : vector<1x512xf32>
    %c53 = arith.constant 53 : index
    %289 = memref.load %arg1[%c53] : memref<204xf32, #tpu.memory_space<smem>>
    %290 = vector.broadcast %289 : f32 to vector<1x512xf32>
    %291 = arith.mulf %290, %49 : vector<1x512xf32>
    %292 = arith.addf %288, %291 : vector<1x512xf32>
    %c61 = arith.constant 61 : index
    %293 = memref.load %arg1[%c61] : memref<204xf32, #tpu.memory_space<smem>>
    %294 = vector.broadcast %293 : f32 to vector<1x512xf32>
    %295 = arith.mulf %294, %61 : vector<1x512xf32>
    %296 = arith.addf %292, %295 : vector<1x512xf32>
    %c69 = arith.constant 69 : index
    %297 = memref.load %arg1[%c69] : memref<204xf32, #tpu.memory_space<smem>>
    %298 = vector.broadcast %297 : f32 to vector<1x512xf32>
    %299 = arith.mulf %298, %73 : vector<1x512xf32>
    %300 = arith.addf %296, %299 : vector<1x512xf32>
    %c77 = arith.constant 77 : index
    %301 = memref.load %arg1[%c77] : memref<204xf32, #tpu.memory_space<smem>>
    %302 = vector.broadcast %301 : f32 to vector<1x512xf32>
    %303 = arith.mulf %302, %85 : vector<1x512xf32>
    %304 = arith.addf %300, %303 : vector<1x512xf32>
    %c85 = arith.constant 85 : index
    %305 = memref.load %arg1[%c85] : memref<204xf32, #tpu.memory_space<smem>>
    %306 = vector.broadcast %305 : f32 to vector<1x512xf32>
    %307 = arith.mulf %306, %97 : vector<1x512xf32>
    %308 = arith.addf %304, %307 : vector<1x512xf32>
    %c93 = arith.constant 93 : index
    %309 = memref.load %arg1[%c93] : memref<204xf32, #tpu.memory_space<smem>>
    %310 = vector.broadcast %309 : f32 to vector<1x512xf32>
    %311 = arith.addf %308, %310 : vector<1x512xf32>
    %cst_16 = arith.constant 0.000000e+00 : f32
    %312 = vector.broadcast %cst_16 : f32 to vector<1x512xf32>
    %313 = arith.maximumf %311, %312 : vector<1x512xf32>
    %c30 = arith.constant 30 : index
    %314 = memref.load %arg1[%c30] : memref<204xf32, #tpu.memory_space<smem>>
    %315 = vector.broadcast %314 : f32 to vector<1x512xf32>
    %316 = arith.mulf %315, %13 : vector<1x512xf32>
    %c38 = arith.constant 38 : index
    %317 = memref.load %arg1[%c38] : memref<204xf32, #tpu.memory_space<smem>>
    %318 = vector.broadcast %317 : f32 to vector<1x512xf32>
    %319 = arith.mulf %318, %25 : vector<1x512xf32>
    %320 = arith.addf %316, %319 : vector<1x512xf32>
    %c46 = arith.constant 46 : index
    %321 = memref.load %arg1[%c46] : memref<204xf32, #tpu.memory_space<smem>>
    %322 = vector.broadcast %321 : f32 to vector<1x512xf32>
    %323 = arith.mulf %322, %37 : vector<1x512xf32>
    %324 = arith.addf %320, %323 : vector<1x512xf32>
    %c54 = arith.constant 54 : index
    %325 = memref.load %arg1[%c54] : memref<204xf32, #tpu.memory_space<smem>>
    %326 = vector.broadcast %325 : f32 to vector<1x512xf32>
    %327 = arith.mulf %326, %49 : vector<1x512xf32>
    %328 = arith.addf %324, %327 : vector<1x512xf32>
    %c62 = arith.constant 62 : index
    %329 = memref.load %arg1[%c62] : memref<204xf32, #tpu.memory_space<smem>>
    %330 = vector.broadcast %329 : f32 to vector<1x512xf32>
    %331 = arith.mulf %330, %61 : vector<1x512xf32>
    %332 = arith.addf %328, %331 : vector<1x512xf32>
    %c70 = arith.constant 70 : index
    %333 = memref.load %arg1[%c70] : memref<204xf32, #tpu.memory_space<smem>>
    %334 = vector.broadcast %333 : f32 to vector<1x512xf32>
    %335 = arith.mulf %334, %73 : vector<1x512xf32>
    %336 = arith.addf %332, %335 : vector<1x512xf32>
    %c78 = arith.constant 78 : index
    %337 = memref.load %arg1[%c78] : memref<204xf32, #tpu.memory_space<smem>>
    %338 = vector.broadcast %337 : f32 to vector<1x512xf32>
    %339 = arith.mulf %338, %85 : vector<1x512xf32>
    %340 = arith.addf %336, %339 : vector<1x512xf32>
    %c86 = arith.constant 86 : index
    %341 = memref.load %arg1[%c86] : memref<204xf32, #tpu.memory_space<smem>>
    %342 = vector.broadcast %341 : f32 to vector<1x512xf32>
    %343 = arith.mulf %342, %97 : vector<1x512xf32>
    %344 = arith.addf %340, %343 : vector<1x512xf32>
    %c94 = arith.constant 94 : index
    %345 = memref.load %arg1[%c94] : memref<204xf32, #tpu.memory_space<smem>>
    %346 = vector.broadcast %345 : f32 to vector<1x512xf32>
    %347 = arith.addf %344, %346 : vector<1x512xf32>
    %cst_17 = arith.constant 0.000000e+00 : f32
    %348 = vector.broadcast %cst_17 : f32 to vector<1x512xf32>
    %349 = arith.maximumf %347, %348 : vector<1x512xf32>
    %c31 = arith.constant 31 : index
    %350 = memref.load %arg1[%c31] : memref<204xf32, #tpu.memory_space<smem>>
    %351 = vector.broadcast %350 : f32 to vector<1x512xf32>
    %352 = arith.mulf %351, %13 : vector<1x512xf32>
    %c39 = arith.constant 39 : index
    %353 = memref.load %arg1[%c39] : memref<204xf32, #tpu.memory_space<smem>>
    %354 = vector.broadcast %353 : f32 to vector<1x512xf32>
    %355 = arith.mulf %354, %25 : vector<1x512xf32>
    %356 = arith.addf %352, %355 : vector<1x512xf32>
    %c47 = arith.constant 47 : index
    %357 = memref.load %arg1[%c47] : memref<204xf32, #tpu.memory_space<smem>>
    %358 = vector.broadcast %357 : f32 to vector<1x512xf32>
    %359 = arith.mulf %358, %37 : vector<1x512xf32>
    %360 = arith.addf %356, %359 : vector<1x512xf32>
    %c55 = arith.constant 55 : index
    %361 = memref.load %arg1[%c55] : memref<204xf32, #tpu.memory_space<smem>>
    %362 = vector.broadcast %361 : f32 to vector<1x512xf32>
    %363 = arith.mulf %362, %49 : vector<1x512xf32>
    %364 = arith.addf %360, %363 : vector<1x512xf32>
    %c63 = arith.constant 63 : index
    %365 = memref.load %arg1[%c63] : memref<204xf32, #tpu.memory_space<smem>>
    %366 = vector.broadcast %365 : f32 to vector<1x512xf32>
    %367 = arith.mulf %366, %61 : vector<1x512xf32>
    %368 = arith.addf %364, %367 : vector<1x512xf32>
    %c71 = arith.constant 71 : index
    %369 = memref.load %arg1[%c71] : memref<204xf32, #tpu.memory_space<smem>>
    %370 = vector.broadcast %369 : f32 to vector<1x512xf32>
    %371 = arith.mulf %370, %73 : vector<1x512xf32>
    %372 = arith.addf %368, %371 : vector<1x512xf32>
    %c79 = arith.constant 79 : index
    %373 = memref.load %arg1[%c79] : memref<204xf32, #tpu.memory_space<smem>>
    %374 = vector.broadcast %373 : f32 to vector<1x512xf32>
    %375 = arith.mulf %374, %85 : vector<1x512xf32>
    %376 = arith.addf %372, %375 : vector<1x512xf32>
    %c87 = arith.constant 87 : index
    %377 = memref.load %arg1[%c87] : memref<204xf32, #tpu.memory_space<smem>>
    %378 = vector.broadcast %377 : f32 to vector<1x512xf32>
    %379 = arith.mulf %378, %97 : vector<1x512xf32>
    %380 = arith.addf %376, %379 : vector<1x512xf32>
    %c95 = arith.constant 95 : index
    %381 = memref.load %arg1[%c95] : memref<204xf32, #tpu.memory_space<smem>>
    %382 = vector.broadcast %381 : f32 to vector<1x512xf32>
    %383 = arith.addf %380, %382 : vector<1x512xf32>
    %cst_18 = arith.constant 0.000000e+00 : f32
    %384 = vector.broadcast %cst_18 : f32 to vector<1x512xf32>
    %385 = arith.maximumf %383, %384 : vector<1x512xf32>
    %c96 = arith.constant 96 : index
    %386 = memref.load %arg1[%c96] : memref<204xf32, #tpu.memory_space<smem>>
    %387 = vector.broadcast %386 : f32 to vector<1x512xf32>
    %388 = arith.mulf %387, %133 : vector<1x512xf32>
    %c104 = arith.constant 104 : index
    %389 = memref.load %arg1[%c104] : memref<204xf32, #tpu.memory_space<smem>>
    %390 = vector.broadcast %389 : f32 to vector<1x512xf32>
    %391 = arith.mulf %390, %169 : vector<1x512xf32>
    %392 = arith.addf %388, %391 : vector<1x512xf32>
    %c112 = arith.constant 112 : index
    %393 = memref.load %arg1[%c112] : memref<204xf32, #tpu.memory_space<smem>>
    %394 = vector.broadcast %393 : f32 to vector<1x512xf32>
    %395 = arith.mulf %394, %205 : vector<1x512xf32>
    %396 = arith.addf %392, %395 : vector<1x512xf32>
    %c120 = arith.constant 120 : index
    %397 = memref.load %arg1[%c120] : memref<204xf32, #tpu.memory_space<smem>>
    %398 = vector.broadcast %397 : f32 to vector<1x512xf32>
    %399 = arith.mulf %398, %241 : vector<1x512xf32>
    %400 = arith.addf %396, %399 : vector<1x512xf32>
    %c128 = arith.constant 128 : index
    %401 = memref.load %arg1[%c128] : memref<204xf32, #tpu.memory_space<smem>>
    %402 = vector.broadcast %401 : f32 to vector<1x512xf32>
    %403 = arith.mulf %402, %277 : vector<1x512xf32>
    %404 = arith.addf %400, %403 : vector<1x512xf32>
    %c136 = arith.constant 136 : index
    %405 = memref.load %arg1[%c136] : memref<204xf32, #tpu.memory_space<smem>>
    %406 = vector.broadcast %405 : f32 to vector<1x512xf32>
    %407 = arith.mulf %406, %313 : vector<1x512xf32>
    %408 = arith.addf %404, %407 : vector<1x512xf32>
    %c144 = arith.constant 144 : index
    %409 = memref.load %arg1[%c144] : memref<204xf32, #tpu.memory_space<smem>>
    %410 = vector.broadcast %409 : f32 to vector<1x512xf32>
    %411 = arith.mulf %410, %349 : vector<1x512xf32>
    %412 = arith.addf %408, %411 : vector<1x512xf32>
    %c152 = arith.constant 152 : index
    %413 = memref.load %arg1[%c152] : memref<204xf32, #tpu.memory_space<smem>>
    %414 = vector.broadcast %413 : f32 to vector<1x512xf32>
    %415 = arith.mulf %414, %385 : vector<1x512xf32>
    %416 = arith.addf %412, %415 : vector<1x512xf32>
    %c160 = arith.constant 160 : index
    %417 = memref.load %arg1[%c160] : memref<204xf32, #tpu.memory_space<smem>>
    %418 = vector.broadcast %417 : f32 to vector<1x512xf32>
    %419 = arith.addf %416, %418 : vector<1x512xf32>
    %cst_19 = arith.constant 0.000000e+00 : f32
    %420 = vector.broadcast %cst_19 : f32 to vector<1x512xf32>
    %421 = arith.maximumf %419, %420 : vector<1x512xf32>
    %c97 = arith.constant 97 : index
    %422 = memref.load %arg1[%c97] : memref<204xf32, #tpu.memory_space<smem>>
    %423 = vector.broadcast %422 : f32 to vector<1x512xf32>
    %424 = arith.mulf %423, %133 : vector<1x512xf32>
    %c105 = arith.constant 105 : index
    %425 = memref.load %arg1[%c105] : memref<204xf32, #tpu.memory_space<smem>>
    %426 = vector.broadcast %425 : f32 to vector<1x512xf32>
    %427 = arith.mulf %426, %169 : vector<1x512xf32>
    %428 = arith.addf %424, %427 : vector<1x512xf32>
    %c113 = arith.constant 113 : index
    %429 = memref.load %arg1[%c113] : memref<204xf32, #tpu.memory_space<smem>>
    %430 = vector.broadcast %429 : f32 to vector<1x512xf32>
    %431 = arith.mulf %430, %205 : vector<1x512xf32>
    %432 = arith.addf %428, %431 : vector<1x512xf32>
    %c121 = arith.constant 121 : index
    %433 = memref.load %arg1[%c121] : memref<204xf32, #tpu.memory_space<smem>>
    %434 = vector.broadcast %433 : f32 to vector<1x512xf32>
    %435 = arith.mulf %434, %241 : vector<1x512xf32>
    %436 = arith.addf %432, %435 : vector<1x512xf32>
    %c129 = arith.constant 129 : index
    %437 = memref.load %arg1[%c129] : memref<204xf32, #tpu.memory_space<smem>>
    %438 = vector.broadcast %437 : f32 to vector<1x512xf32>
    %439 = arith.mulf %438, %277 : vector<1x512xf32>
    %440 = arith.addf %436, %439 : vector<1x512xf32>
    %c137 = arith.constant 137 : index
    %441 = memref.load %arg1[%c137] : memref<204xf32, #tpu.memory_space<smem>>
    %442 = vector.broadcast %441 : f32 to vector<1x512xf32>
    %443 = arith.mulf %442, %313 : vector<1x512xf32>
    %444 = arith.addf %440, %443 : vector<1x512xf32>
    %c145 = arith.constant 145 : index
    %445 = memref.load %arg1[%c145] : memref<204xf32, #tpu.memory_space<smem>>
    %446 = vector.broadcast %445 : f32 to vector<1x512xf32>
    %447 = arith.mulf %446, %349 : vector<1x512xf32>
    %448 = arith.addf %444, %447 : vector<1x512xf32>
    %c153 = arith.constant 153 : index
    %449 = memref.load %arg1[%c153] : memref<204xf32, #tpu.memory_space<smem>>
    %450 = vector.broadcast %449 : f32 to vector<1x512xf32>
    %451 = arith.mulf %450, %385 : vector<1x512xf32>
    %452 = arith.addf %448, %451 : vector<1x512xf32>
    %c161 = arith.constant 161 : index
    %453 = memref.load %arg1[%c161] : memref<204xf32, #tpu.memory_space<smem>>
    %454 = vector.broadcast %453 : f32 to vector<1x512xf32>
    %455 = arith.addf %452, %454 : vector<1x512xf32>
    %cst_20 = arith.constant 0.000000e+00 : f32
    %456 = vector.broadcast %cst_20 : f32 to vector<1x512xf32>
    %457 = arith.maximumf %455, %456 : vector<1x512xf32>
    %c98 = arith.constant 98 : index
    %458 = memref.load %arg1[%c98] : memref<204xf32, #tpu.memory_space<smem>>
    %459 = vector.broadcast %458 : f32 to vector<1x512xf32>
    %460 = arith.mulf %459, %133 : vector<1x512xf32>
    %c106 = arith.constant 106 : index
    %461 = memref.load %arg1[%c106] : memref<204xf32, #tpu.memory_space<smem>>
    %462 = vector.broadcast %461 : f32 to vector<1x512xf32>
    %463 = arith.mulf %462, %169 : vector<1x512xf32>
    %464 = arith.addf %460, %463 : vector<1x512xf32>
    %c114 = arith.constant 114 : index
    %465 = memref.load %arg1[%c114] : memref<204xf32, #tpu.memory_space<smem>>
    %466 = vector.broadcast %465 : f32 to vector<1x512xf32>
    %467 = arith.mulf %466, %205 : vector<1x512xf32>
    %468 = arith.addf %464, %467 : vector<1x512xf32>
    %c122 = arith.constant 122 : index
    %469 = memref.load %arg1[%c122] : memref<204xf32, #tpu.memory_space<smem>>
    %470 = vector.broadcast %469 : f32 to vector<1x512xf32>
    %471 = arith.mulf %470, %241 : vector<1x512xf32>
    %472 = arith.addf %468, %471 : vector<1x512xf32>
    %c130 = arith.constant 130 : index
    %473 = memref.load %arg1[%c130] : memref<204xf32, #tpu.memory_space<smem>>
    %474 = vector.broadcast %473 : f32 to vector<1x512xf32>
    %475 = arith.mulf %474, %277 : vector<1x512xf32>
    %476 = arith.addf %472, %475 : vector<1x512xf32>
    %c138 = arith.constant 138 : index
    %477 = memref.load %arg1[%c138] : memref<204xf32, #tpu.memory_space<smem>>
    %478 = vector.broadcast %477 : f32 to vector<1x512xf32>
    %479 = arith.mulf %478, %313 : vector<1x512xf32>
    %480 = arith.addf %476, %479 : vector<1x512xf32>
    %c146 = arith.constant 146 : index
    %481 = memref.load %arg1[%c146] : memref<204xf32, #tpu.memory_space<smem>>
    %482 = vector.broadcast %481 : f32 to vector<1x512xf32>
    %483 = arith.mulf %482, %349 : vector<1x512xf32>
    %484 = arith.addf %480, %483 : vector<1x512xf32>
    %c154 = arith.constant 154 : index
    %485 = memref.load %arg1[%c154] : memref<204xf32, #tpu.memory_space<smem>>
    %486 = vector.broadcast %485 : f32 to vector<1x512xf32>
    %487 = arith.mulf %486, %385 : vector<1x512xf32>
    %488 = arith.addf %484, %487 : vector<1x512xf32>
    %c162 = arith.constant 162 : index
    %489 = memref.load %arg1[%c162] : memref<204xf32, #tpu.memory_space<smem>>
    %490 = vector.broadcast %489 : f32 to vector<1x512xf32>
    %491 = arith.addf %488, %490 : vector<1x512xf32>
    %cst_21 = arith.constant 0.000000e+00 : f32
    %492 = vector.broadcast %cst_21 : f32 to vector<1x512xf32>
    %493 = arith.maximumf %491, %492 : vector<1x512xf32>
    %c99 = arith.constant 99 : index
    %494 = memref.load %arg1[%c99] : memref<204xf32, #tpu.memory_space<smem>>
    %495 = vector.broadcast %494 : f32 to vector<1x512xf32>
    %496 = arith.mulf %495, %133 : vector<1x512xf32>
    %c107 = arith.constant 107 : index
    %497 = memref.load %arg1[%c107] : memref<204xf32, #tpu.memory_space<smem>>
    %498 = vector.broadcast %497 : f32 to vector<1x512xf32>
    %499 = arith.mulf %498, %169 : vector<1x512xf32>
    %500 = arith.addf %496, %499 : vector<1x512xf32>
    %c115 = arith.constant 115 : index
    %501 = memref.load %arg1[%c115] : memref<204xf32, #tpu.memory_space<smem>>
    %502 = vector.broadcast %501 : f32 to vector<1x512xf32>
    %503 = arith.mulf %502, %205 : vector<1x512xf32>
    %504 = arith.addf %500, %503 : vector<1x512xf32>
    %c123 = arith.constant 123 : index
    %505 = memref.load %arg1[%c123] : memref<204xf32, #tpu.memory_space<smem>>
    %506 = vector.broadcast %505 : f32 to vector<1x512xf32>
    %507 = arith.mulf %506, %241 : vector<1x512xf32>
    %508 = arith.addf %504, %507 : vector<1x512xf32>
    %c131 = arith.constant 131 : index
    %509 = memref.load %arg1[%c131] : memref<204xf32, #tpu.memory_space<smem>>
    %510 = vector.broadcast %509 : f32 to vector<1x512xf32>
    %511 = arith.mulf %510, %277 : vector<1x512xf32>
    %512 = arith.addf %508, %511 : vector<1x512xf32>
    %c139 = arith.constant 139 : index
    %513 = memref.load %arg1[%c139] : memref<204xf32, #tpu.memory_space<smem>>
    %514 = vector.broadcast %513 : f32 to vector<1x512xf32>
    %515 = arith.mulf %514, %313 : vector<1x512xf32>
    %516 = arith.addf %512, %515 : vector<1x512xf32>
    %c147 = arith.constant 147 : index
    %517 = memref.load %arg1[%c147] : memref<204xf32, #tpu.memory_space<smem>>
    %518 = vector.broadcast %517 : f32 to vector<1x512xf32>
    %519 = arith.mulf %518, %349 : vector<1x512xf32>
    %520 = arith.addf %516, %519 : vector<1x512xf32>
    %c155 = arith.constant 155 : index
    %521 = memref.load %arg1[%c155] : memref<204xf32, #tpu.memory_space<smem>>
    %522 = vector.broadcast %521 : f32 to vector<1x512xf32>
    %523 = arith.mulf %522, %385 : vector<1x512xf32>
    %524 = arith.addf %520, %523 : vector<1x512xf32>
    %c163 = arith.constant 163 : index
    %525 = memref.load %arg1[%c163] : memref<204xf32, #tpu.memory_space<smem>>
    %526 = vector.broadcast %525 : f32 to vector<1x512xf32>
    %527 = arith.addf %524, %526 : vector<1x512xf32>
    %cst_22 = arith.constant 0.000000e+00 : f32
    %528 = vector.broadcast %cst_22 : f32 to vector<1x512xf32>
    %529 = arith.maximumf %527, %528 : vector<1x512xf32>
    %c100 = arith.constant 100 : index
    %530 = memref.load %arg1[%c100] : memref<204xf32, #tpu.memory_space<smem>>
    %531 = vector.broadcast %530 : f32 to vector<1x512xf32>
    %532 = arith.mulf %531, %133 : vector<1x512xf32>
    %c108 = arith.constant 108 : index
    %533 = memref.load %arg1[%c108] : memref<204xf32, #tpu.memory_space<smem>>
    %534 = vector.broadcast %533 : f32 to vector<1x512xf32>
    %535 = arith.mulf %534, %169 : vector<1x512xf32>
    %536 = arith.addf %532, %535 : vector<1x512xf32>
    %c116 = arith.constant 116 : index
    %537 = memref.load %arg1[%c116] : memref<204xf32, #tpu.memory_space<smem>>
    %538 = vector.broadcast %537 : f32 to vector<1x512xf32>
    %539 = arith.mulf %538, %205 : vector<1x512xf32>
    %540 = arith.addf %536, %539 : vector<1x512xf32>
    %c124 = arith.constant 124 : index
    %541 = memref.load %arg1[%c124] : memref<204xf32, #tpu.memory_space<smem>>
    %542 = vector.broadcast %541 : f32 to vector<1x512xf32>
    %543 = arith.mulf %542, %241 : vector<1x512xf32>
    %544 = arith.addf %540, %543 : vector<1x512xf32>
    %c132 = arith.constant 132 : index
    %545 = memref.load %arg1[%c132] : memref<204xf32, #tpu.memory_space<smem>>
    %546 = vector.broadcast %545 : f32 to vector<1x512xf32>
    %547 = arith.mulf %546, %277 : vector<1x512xf32>
    %548 = arith.addf %544, %547 : vector<1x512xf32>
    %c140 = arith.constant 140 : index
    %549 = memref.load %arg1[%c140] : memref<204xf32, #tpu.memory_space<smem>>
    %550 = vector.broadcast %549 : f32 to vector<1x512xf32>
    %551 = arith.mulf %550, %313 : vector<1x512xf32>
    %552 = arith.addf %548, %551 : vector<1x512xf32>
    %c148 = arith.constant 148 : index
    %553 = memref.load %arg1[%c148] : memref<204xf32, #tpu.memory_space<smem>>
    %554 = vector.broadcast %553 : f32 to vector<1x512xf32>
    %555 = arith.mulf %554, %349 : vector<1x512xf32>
    %556 = arith.addf %552, %555 : vector<1x512xf32>
    %c156 = arith.constant 156 : index
    %557 = memref.load %arg1[%c156] : memref<204xf32, #tpu.memory_space<smem>>
    %558 = vector.broadcast %557 : f32 to vector<1x512xf32>
    %559 = arith.mulf %558, %385 : vector<1x512xf32>
    %560 = arith.addf %556, %559 : vector<1x512xf32>
    %c164 = arith.constant 164 : index
    %561 = memref.load %arg1[%c164] : memref<204xf32, #tpu.memory_space<smem>>
    %562 = vector.broadcast %561 : f32 to vector<1x512xf32>
    %563 = arith.addf %560, %562 : vector<1x512xf32>
    %cst_23 = arith.constant 0.000000e+00 : f32
    %564 = vector.broadcast %cst_23 : f32 to vector<1x512xf32>
    %565 = arith.maximumf %563, %564 : vector<1x512xf32>
    %c101 = arith.constant 101 : index
    %566 = memref.load %arg1[%c101] : memref<204xf32, #tpu.memory_space<smem>>
    %567 = vector.broadcast %566 : f32 to vector<1x512xf32>
    %568 = arith.mulf %567, %133 : vector<1x512xf32>
    %c109 = arith.constant 109 : index
    %569 = memref.load %arg1[%c109] : memref<204xf32, #tpu.memory_space<smem>>
    %570 = vector.broadcast %569 : f32 to vector<1x512xf32>
    %571 = arith.mulf %570, %169 : vector<1x512xf32>
    %572 = arith.addf %568, %571 : vector<1x512xf32>
    %c117 = arith.constant 117 : index
    %573 = memref.load %arg1[%c117] : memref<204xf32, #tpu.memory_space<smem>>
    %574 = vector.broadcast %573 : f32 to vector<1x512xf32>
    %575 = arith.mulf %574, %205 : vector<1x512xf32>
    %576 = arith.addf %572, %575 : vector<1x512xf32>
    %c125 = arith.constant 125 : index
    %577 = memref.load %arg1[%c125] : memref<204xf32, #tpu.memory_space<smem>>
    %578 = vector.broadcast %577 : f32 to vector<1x512xf32>
    %579 = arith.mulf %578, %241 : vector<1x512xf32>
    %580 = arith.addf %576, %579 : vector<1x512xf32>
    %c133 = arith.constant 133 : index
    %581 = memref.load %arg1[%c133] : memref<204xf32, #tpu.memory_space<smem>>
    %582 = vector.broadcast %581 : f32 to vector<1x512xf32>
    %583 = arith.mulf %582, %277 : vector<1x512xf32>
    %584 = arith.addf %580, %583 : vector<1x512xf32>
    %c141 = arith.constant 141 : index
    %585 = memref.load %arg1[%c141] : memref<204xf32, #tpu.memory_space<smem>>
    %586 = vector.broadcast %585 : f32 to vector<1x512xf32>
    %587 = arith.mulf %586, %313 : vector<1x512xf32>
    %588 = arith.addf %584, %587 : vector<1x512xf32>
    %c149 = arith.constant 149 : index
    %589 = memref.load %arg1[%c149] : memref<204xf32, #tpu.memory_space<smem>>
    %590 = vector.broadcast %589 : f32 to vector<1x512xf32>
    %591 = arith.mulf %590, %349 : vector<1x512xf32>
    %592 = arith.addf %588, %591 : vector<1x512xf32>
    %c157 = arith.constant 157 : index
    %593 = memref.load %arg1[%c157] : memref<204xf32, #tpu.memory_space<smem>>
    %594 = vector.broadcast %593 : f32 to vector<1x512xf32>
    %595 = arith.mulf %594, %385 : vector<1x512xf32>
    %596 = arith.addf %592, %595 : vector<1x512xf32>
    %c165 = arith.constant 165 : index
    %597 = memref.load %arg1[%c165] : memref<204xf32, #tpu.memory_space<smem>>
    %598 = vector.broadcast %597 : f32 to vector<1x512xf32>
    %599 = arith.addf %596, %598 : vector<1x512xf32>
    %cst_24 = arith.constant 0.000000e+00 : f32
    %600 = vector.broadcast %cst_24 : f32 to vector<1x512xf32>
    %601 = arith.maximumf %599, %600 : vector<1x512xf32>
    %c102 = arith.constant 102 : index
    %602 = memref.load %arg1[%c102] : memref<204xf32, #tpu.memory_space<smem>>
    %603 = vector.broadcast %602 : f32 to vector<1x512xf32>
    %604 = arith.mulf %603, %133 : vector<1x512xf32>
    %c110 = arith.constant 110 : index
    %605 = memref.load %arg1[%c110] : memref<204xf32, #tpu.memory_space<smem>>
    %606 = vector.broadcast %605 : f32 to vector<1x512xf32>
    %607 = arith.mulf %606, %169 : vector<1x512xf32>
    %608 = arith.addf %604, %607 : vector<1x512xf32>
    %c118 = arith.constant 118 : index
    %609 = memref.load %arg1[%c118] : memref<204xf32, #tpu.memory_space<smem>>
    %610 = vector.broadcast %609 : f32 to vector<1x512xf32>
    %611 = arith.mulf %610, %205 : vector<1x512xf32>
    %612 = arith.addf %608, %611 : vector<1x512xf32>
    %c126 = arith.constant 126 : index
    %613 = memref.load %arg1[%c126] : memref<204xf32, #tpu.memory_space<smem>>
    %614 = vector.broadcast %613 : f32 to vector<1x512xf32>
    %615 = arith.mulf %614, %241 : vector<1x512xf32>
    %616 = arith.addf %612, %615 : vector<1x512xf32>
    %c134 = arith.constant 134 : index
    %617 = memref.load %arg1[%c134] : memref<204xf32, #tpu.memory_space<smem>>
    %618 = vector.broadcast %617 : f32 to vector<1x512xf32>
    %619 = arith.mulf %618, %277 : vector<1x512xf32>
    %620 = arith.addf %616, %619 : vector<1x512xf32>
    %c142 = arith.constant 142 : index
    %621 = memref.load %arg1[%c142] : memref<204xf32, #tpu.memory_space<smem>>
    %622 = vector.broadcast %621 : f32 to vector<1x512xf32>
    %623 = arith.mulf %622, %313 : vector<1x512xf32>
    %624 = arith.addf %620, %623 : vector<1x512xf32>
    %c150 = arith.constant 150 : index
    %625 = memref.load %arg1[%c150] : memref<204xf32, #tpu.memory_space<smem>>
    %626 = vector.broadcast %625 : f32 to vector<1x512xf32>
    %627 = arith.mulf %626, %349 : vector<1x512xf32>
    %628 = arith.addf %624, %627 : vector<1x512xf32>
    %c158 = arith.constant 158 : index
    %629 = memref.load %arg1[%c158] : memref<204xf32, #tpu.memory_space<smem>>
    %630 = vector.broadcast %629 : f32 to vector<1x512xf32>
    %631 = arith.mulf %630, %385 : vector<1x512xf32>
    %632 = arith.addf %628, %631 : vector<1x512xf32>
    %c166 = arith.constant 166 : index
    %633 = memref.load %arg1[%c166] : memref<204xf32, #tpu.memory_space<smem>>
    %634 = vector.broadcast %633 : f32 to vector<1x512xf32>
    %635 = arith.addf %632, %634 : vector<1x512xf32>
    %cst_25 = arith.constant 0.000000e+00 : f32
    %636 = vector.broadcast %cst_25 : f32 to vector<1x512xf32>
    %637 = arith.maximumf %635, %636 : vector<1x512xf32>
    %c103 = arith.constant 103 : index
    %638 = memref.load %arg1[%c103] : memref<204xf32, #tpu.memory_space<smem>>
    %639 = vector.broadcast %638 : f32 to vector<1x512xf32>
    %640 = arith.mulf %639, %133 : vector<1x512xf32>
    %c111 = arith.constant 111 : index
    %641 = memref.load %arg1[%c111] : memref<204xf32, #tpu.memory_space<smem>>
    %642 = vector.broadcast %641 : f32 to vector<1x512xf32>
    %643 = arith.mulf %642, %169 : vector<1x512xf32>
    %644 = arith.addf %640, %643 : vector<1x512xf32>
    %c119 = arith.constant 119 : index
    %645 = memref.load %arg1[%c119] : memref<204xf32, #tpu.memory_space<smem>>
    %646 = vector.broadcast %645 : f32 to vector<1x512xf32>
    %647 = arith.mulf %646, %205 : vector<1x512xf32>
    %648 = arith.addf %644, %647 : vector<1x512xf32>
    %c127 = arith.constant 127 : index
    %649 = memref.load %arg1[%c127] : memref<204xf32, #tpu.memory_space<smem>>
    %650 = vector.broadcast %649 : f32 to vector<1x512xf32>
    %651 = arith.mulf %650, %241 : vector<1x512xf32>
    %652 = arith.addf %648, %651 : vector<1x512xf32>
    %c135 = arith.constant 135 : index
    %653 = memref.load %arg1[%c135] : memref<204xf32, #tpu.memory_space<smem>>
    %654 = vector.broadcast %653 : f32 to vector<1x512xf32>
    %655 = arith.mulf %654, %277 : vector<1x512xf32>
    %656 = arith.addf %652, %655 : vector<1x512xf32>
    %c143 = arith.constant 143 : index
    %657 = memref.load %arg1[%c143] : memref<204xf32, #tpu.memory_space<smem>>
    %658 = vector.broadcast %657 : f32 to vector<1x512xf32>
    %659 = arith.mulf %658, %313 : vector<1x512xf32>
    %660 = arith.addf %656, %659 : vector<1x512xf32>
    %c151 = arith.constant 151 : index
    %661 = memref.load %arg1[%c151] : memref<204xf32, #tpu.memory_space<smem>>
    %662 = vector.broadcast %661 : f32 to vector<1x512xf32>
    %663 = arith.mulf %662, %349 : vector<1x512xf32>
    %664 = arith.addf %660, %663 : vector<1x512xf32>
    %c159 = arith.constant 159 : index
    %665 = memref.load %arg1[%c159] : memref<204xf32, #tpu.memory_space<smem>>
    %666 = vector.broadcast %665 : f32 to vector<1x512xf32>
    %667 = arith.mulf %666, %385 : vector<1x512xf32>
    %668 = arith.addf %664, %667 : vector<1x512xf32>
    %c167 = arith.constant 167 : index
    %669 = memref.load %arg1[%c167] : memref<204xf32, #tpu.memory_space<smem>>
    %670 = vector.broadcast %669 : f32 to vector<1x512xf32>
    %671 = arith.addf %668, %670 : vector<1x512xf32>
    %cst_26 = arith.constant 0.000000e+00 : f32
    %672 = vector.broadcast %cst_26 : f32 to vector<1x512xf32>
    %673 = arith.maximumf %671, %672 : vector<1x512xf32>
    %c168 = arith.constant 168 : index
    %674 = memref.load %arg1[%c168] : memref<204xf32, #tpu.memory_space<smem>>
    %675 = vector.broadcast %674 : f32 to vector<1x512xf32>
    %676 = arith.mulf %675, %421 : vector<1x512xf32>
    %c172 = arith.constant 172 : index
    %677 = memref.load %arg1[%c172] : memref<204xf32, #tpu.memory_space<smem>>
    %678 = vector.broadcast %677 : f32 to vector<1x512xf32>
    %679 = arith.mulf %678, %457 : vector<1x512xf32>
    %680 = arith.addf %676, %679 : vector<1x512xf32>
    %c176 = arith.constant 176 : index
    %681 = memref.load %arg1[%c176] : memref<204xf32, #tpu.memory_space<smem>>
    %682 = vector.broadcast %681 : f32 to vector<1x512xf32>
    %683 = arith.mulf %682, %493 : vector<1x512xf32>
    %684 = arith.addf %680, %683 : vector<1x512xf32>
    %c180 = arith.constant 180 : index
    %685 = memref.load %arg1[%c180] : memref<204xf32, #tpu.memory_space<smem>>
    %686 = vector.broadcast %685 : f32 to vector<1x512xf32>
    %687 = arith.mulf %686, %529 : vector<1x512xf32>
    %688 = arith.addf %684, %687 : vector<1x512xf32>
    %c184 = arith.constant 184 : index
    %689 = memref.load %arg1[%c184] : memref<204xf32, #tpu.memory_space<smem>>
    %690 = vector.broadcast %689 : f32 to vector<1x512xf32>
    %691 = arith.mulf %690, %565 : vector<1x512xf32>
    %692 = arith.addf %688, %691 : vector<1x512xf32>
    %c188 = arith.constant 188 : index
    %693 = memref.load %arg1[%c188] : memref<204xf32, #tpu.memory_space<smem>>
    %694 = vector.broadcast %693 : f32 to vector<1x512xf32>
    %695 = arith.mulf %694, %601 : vector<1x512xf32>
    %696 = arith.addf %692, %695 : vector<1x512xf32>
    %c192 = arith.constant 192 : index
    %697 = memref.load %arg1[%c192] : memref<204xf32, #tpu.memory_space<smem>>
    %698 = vector.broadcast %697 : f32 to vector<1x512xf32>
    %699 = arith.mulf %698, %637 : vector<1x512xf32>
    %700 = arith.addf %696, %699 : vector<1x512xf32>
    %c196 = arith.constant 196 : index
    %701 = memref.load %arg1[%c196] : memref<204xf32, #tpu.memory_space<smem>>
    %702 = vector.broadcast %701 : f32 to vector<1x512xf32>
    %703 = arith.mulf %702, %673 : vector<1x512xf32>
    %704 = arith.addf %700, %703 : vector<1x512xf32>
    %c200 = arith.constant 200 : index
    %705 = memref.load %arg1[%c200] : memref<204xf32, #tpu.memory_space<smem>>
    %706 = vector.broadcast %705 : f32 to vector<1x512xf32>
    %707 = arith.addf %704, %706 : vector<1x512xf32>
    %c169 = arith.constant 169 : index
    %708 = memref.load %arg1[%c169] : memref<204xf32, #tpu.memory_space<smem>>
    %709 = vector.broadcast %708 : f32 to vector<1x512xf32>
    %710 = arith.mulf %709, %421 : vector<1x512xf32>
    %c173 = arith.constant 173 : index
    %711 = memref.load %arg1[%c173] : memref<204xf32, #tpu.memory_space<smem>>
    %712 = vector.broadcast %711 : f32 to vector<1x512xf32>
    %713 = arith.mulf %712, %457 : vector<1x512xf32>
    %714 = arith.addf %710, %713 : vector<1x512xf32>
    %c177 = arith.constant 177 : index
    %715 = memref.load %arg1[%c177] : memref<204xf32, #tpu.memory_space<smem>>
    %716 = vector.broadcast %715 : f32 to vector<1x512xf32>
    %717 = arith.mulf %716, %493 : vector<1x512xf32>
    %718 = arith.addf %714, %717 : vector<1x512xf32>
    %c181 = arith.constant 181 : index
    %719 = memref.load %arg1[%c181] : memref<204xf32, #tpu.memory_space<smem>>
    %720 = vector.broadcast %719 : f32 to vector<1x512xf32>
    %721 = arith.mulf %720, %529 : vector<1x512xf32>
    %722 = arith.addf %718, %721 : vector<1x512xf32>
    %c185 = arith.constant 185 : index
    %723 = memref.load %arg1[%c185] : memref<204xf32, #tpu.memory_space<smem>>
    %724 = vector.broadcast %723 : f32 to vector<1x512xf32>
    %725 = arith.mulf %724, %565 : vector<1x512xf32>
    %726 = arith.addf %722, %725 : vector<1x512xf32>
    %c189 = arith.constant 189 : index
    %727 = memref.load %arg1[%c189] : memref<204xf32, #tpu.memory_space<smem>>
    %728 = vector.broadcast %727 : f32 to vector<1x512xf32>
    %729 = arith.mulf %728, %601 : vector<1x512xf32>
    %730 = arith.addf %726, %729 : vector<1x512xf32>
    %c193 = arith.constant 193 : index
    %731 = memref.load %arg1[%c193] : memref<204xf32, #tpu.memory_space<smem>>
    %732 = vector.broadcast %731 : f32 to vector<1x512xf32>
    %733 = arith.mulf %732, %637 : vector<1x512xf32>
    %734 = arith.addf %730, %733 : vector<1x512xf32>
    %c197 = arith.constant 197 : index
    %735 = memref.load %arg1[%c197] : memref<204xf32, #tpu.memory_space<smem>>
    %736 = vector.broadcast %735 : f32 to vector<1x512xf32>
    %737 = arith.mulf %736, %673 : vector<1x512xf32>
    %738 = arith.addf %734, %737 : vector<1x512xf32>
    %c201 = arith.constant 201 : index
    %739 = memref.load %arg1[%c201] : memref<204xf32, #tpu.memory_space<smem>>
    %740 = vector.broadcast %739 : f32 to vector<1x512xf32>
    %741 = arith.addf %738, %740 : vector<1x512xf32>
    %c170 = arith.constant 170 : index
    %742 = memref.load %arg1[%c170] : memref<204xf32, #tpu.memory_space<smem>>
    %743 = vector.broadcast %742 : f32 to vector<1x512xf32>
    %744 = arith.mulf %743, %421 : vector<1x512xf32>
    %c174 = arith.constant 174 : index
    %745 = memref.load %arg1[%c174] : memref<204xf32, #tpu.memory_space<smem>>
    %746 = vector.broadcast %745 : f32 to vector<1x512xf32>
    %747 = arith.mulf %746, %457 : vector<1x512xf32>
    %748 = arith.addf %744, %747 : vector<1x512xf32>
    %c178 = arith.constant 178 : index
    %749 = memref.load %arg1[%c178] : memref<204xf32, #tpu.memory_space<smem>>
    %750 = vector.broadcast %749 : f32 to vector<1x512xf32>
    %751 = arith.mulf %750, %493 : vector<1x512xf32>
    %752 = arith.addf %748, %751 : vector<1x512xf32>
    %c182 = arith.constant 182 : index
    %753 = memref.load %arg1[%c182] : memref<204xf32, #tpu.memory_space<smem>>
    %754 = vector.broadcast %753 : f32 to vector<1x512xf32>
    %755 = arith.mulf %754, %529 : vector<1x512xf32>
    %756 = arith.addf %752, %755 : vector<1x512xf32>
    %c186 = arith.constant 186 : index
    %757 = memref.load %arg1[%c186] : memref<204xf32, #tpu.memory_space<smem>>
    %758 = vector.broadcast %757 : f32 to vector<1x512xf32>
    %759 = arith.mulf %758, %565 : vector<1x512xf32>
    %760 = arith.addf %756, %759 : vector<1x512xf32>
    %c190 = arith.constant 190 : index
    %761 = memref.load %arg1[%c190] : memref<204xf32, #tpu.memory_space<smem>>
    %762 = vector.broadcast %761 : f32 to vector<1x512xf32>
    %763 = arith.mulf %762, %601 : vector<1x512xf32>
    %764 = arith.addf %760, %763 : vector<1x512xf32>
    %c194 = arith.constant 194 : index
    %765 = memref.load %arg1[%c194] : memref<204xf32, #tpu.memory_space<smem>>
    %766 = vector.broadcast %765 : f32 to vector<1x512xf32>
    %767 = arith.mulf %766, %637 : vector<1x512xf32>
    %768 = arith.addf %764, %767 : vector<1x512xf32>
    %c198 = arith.constant 198 : index
    %769 = memref.load %arg1[%c198] : memref<204xf32, #tpu.memory_space<smem>>
    %770 = vector.broadcast %769 : f32 to vector<1x512xf32>
    %771 = arith.mulf %770, %673 : vector<1x512xf32>
    %772 = arith.addf %768, %771 : vector<1x512xf32>
    %c202 = arith.constant 202 : index
    %773 = memref.load %arg1[%c202] : memref<204xf32, #tpu.memory_space<smem>>
    %774 = vector.broadcast %773 : f32 to vector<1x512xf32>
    %775 = arith.addf %772, %774 : vector<1x512xf32>
    %c171 = arith.constant 171 : index
    %776 = memref.load %arg1[%c171] : memref<204xf32, #tpu.memory_space<smem>>
    %777 = vector.broadcast %776 : f32 to vector<1x512xf32>
    %778 = arith.mulf %777, %421 : vector<1x512xf32>
    %c175 = arith.constant 175 : index
    %779 = memref.load %arg1[%c175] : memref<204xf32, #tpu.memory_space<smem>>
    %780 = vector.broadcast %779 : f32 to vector<1x512xf32>
    %781 = arith.mulf %780, %457 : vector<1x512xf32>
    %782 = arith.addf %778, %781 : vector<1x512xf32>
    %c179 = arith.constant 179 : index
    %783 = memref.load %arg1[%c179] : memref<204xf32, #tpu.memory_space<smem>>
    %784 = vector.broadcast %783 : f32 to vector<1x512xf32>
    %785 = arith.mulf %784, %493 : vector<1x512xf32>
    %786 = arith.addf %782, %785 : vector<1x512xf32>
    %c183 = arith.constant 183 : index
    %787 = memref.load %arg1[%c183] : memref<204xf32, #tpu.memory_space<smem>>
    %788 = vector.broadcast %787 : f32 to vector<1x512xf32>
    %789 = arith.mulf %788, %529 : vector<1x512xf32>
    %790 = arith.addf %786, %789 : vector<1x512xf32>
    %c187 = arith.constant 187 : index
    %791 = memref.load %arg1[%c187] : memref<204xf32, #tpu.memory_space<smem>>
    %792 = vector.broadcast %791 : f32 to vector<1x512xf32>
    %793 = arith.mulf %792, %565 : vector<1x512xf32>
    %794 = arith.addf %790, %793 : vector<1x512xf32>
    %c191 = arith.constant 191 : index
    %795 = memref.load %arg1[%c191] : memref<204xf32, #tpu.memory_space<smem>>
    %796 = vector.broadcast %795 : f32 to vector<1x512xf32>
    %797 = arith.mulf %796, %601 : vector<1x512xf32>
    %798 = arith.addf %794, %797 : vector<1x512xf32>
    %c195 = arith.constant 195 : index
    %799 = memref.load %arg1[%c195] : memref<204xf32, #tpu.memory_space<smem>>
    %800 = vector.broadcast %799 : f32 to vector<1x512xf32>
    %801 = arith.mulf %800, %637 : vector<1x512xf32>
    %802 = arith.addf %798, %801 : vector<1x512xf32>
    %c199 = arith.constant 199 : index
    %803 = memref.load %arg1[%c199] : memref<204xf32, #tpu.memory_space<smem>>
    %804 = vector.broadcast %803 : f32 to vector<1x512xf32>
    %805 = arith.mulf %804, %673 : vector<1x512xf32>
    %806 = arith.addf %802, %805 : vector<1x512xf32>
    %c203 = arith.constant 203 : index
    %807 = memref.load %arg1[%c203] : memref<204xf32, #tpu.memory_space<smem>>
    %808 = vector.broadcast %807 : f32 to vector<1x512xf32>
    %809 = arith.addf %806, %808 : vector<1x512xf32>
    %810 = tpu.concatenate %707, %741, %775, %809 in 0 : vector<1x512xf32>, vector<1x512xf32>, vector<1x512xf32>, vector<1x512xf32> -> vector<4x512xf32>
    %c0_27 = arith.constant 0 : index
    %c0_28 = arith.constant 0 : index
    %811 = vector.load %arg3[%c0_27, %c0_28] : memref<4x512xf32, #tpu.memory_space<vmem>>, vector<4x512xf32>
    tpu.vector_store %arg3[%c0_27, %c0_28], %810 {strides = array<i32>} : memref<4x512xf32, #tpu.memory_space<vmem>>, vector<4x512xf32>,
    return
  }
  func.func @transform_0(%arg0: i32) -> i32 {
    %c0_i32 = arith.constant 0 : i32
    %c0_i32_0 = arith.constant 0 : i32
    return %c0_i32 : i32
  }
  func.func @transform_1(%arg0: i32) -> (i32, i32) {
    %c0_i32 = arith.constant 0 : i32
    %c0_i32_0 = arith.constant 0 : i32
    return %c0_i32, %arg0 : i32, i32
  }
  func.func @transform_2(%arg0: i32) -> (i32, i32) {
    %c0_i32 = arith.constant 0 : i32
    %c0_i32_0 = arith.constant 0 : i32
    return %c0_i32, %arg0 : i32, i32
  }
}

</mosaic_0001>

<bundles_post_ra>
// kernel: blob_classifier_forward.1
= control target key start
LH: loop header
LB: loop body
LE: loop exit
PB: predicated region body
PF: predicated region fallthrough
CT: control target
= control target key end

     0   :  { %7 = vsyncpa [#allocation3], 0  ;;  %s1404_s9 = smov 0   ;;  %s2277_s0 = inlined_call_operand.vmem [shape: f32[204], index: 0, kind: input, shape index: {}]   ;;  %s2278_s1 = inlined_call_operand.vmem [shape: f32[2,1024], index: 1, kind: input, shape index: {}]   ;;  %s2279_s2 = inlined_call_operand.vmem [shape: f32[4,1024], index: 2, kind: output, shape index: {}]  }
   0x1 LB: > { %s1125_s10 = sadd.s32 4294967295, %s1386_s9   ;;  %p1127_p0 = scmp.ge.s32.totalorder %s1386_s9, 1  ;;  %s1386_s9 = sphi %s1404_s9, %s13_s9  }
   0x2   : > { %p91_p1 = scmp.lt.s32.totalorder %s1386_s9, 3  ;;  %s104_s13 = sshll.u32 %s2277_s0, 4  ;;  %s105_s13 = int_to_ptr.vmem [resolvable:$true] %s104_s13 }
   0x3   : > { %p1419_p3 = scmp.eq.s32.totalorder %s1125_s10, 0  ;;  %s1361_s16 = scalar_lea.vmem %s105_s13, 32 }
   0x4   : > { %p1415_p2 = pnand %p1127_p0, %p91_p1  ;;  %p1362_p6 = scmp.ne.s32.totalorder %s105_s13, %s1361_s16 }
   0x5   : > { %p1369_p10 = scmp.lt.s32.totalorder %s105_s13, %s105_s13  ;;  %p1370_p11 = scmp.lt.s32.totalorder %s1361_s16, %s1361_s16 }
   0x6   : > { %p1346_p4 = pneg %p1415_p2 }
   0x7   : > { %p1371_p12 = por %p1370_p11, %p1369_p10 }
   0x8   : > { %p1347_p5 = pnand %p1419_p3, %p1346_p4 }
   0xa   : > { %p1363_p7 = pneg %p1347_p5 }
   0xc   : > { %p1364_p8 = pnand %p1363_p7, %p1362_p6 }
   0xe   : > { %p1365_p9 = pneg %p1364_p8 }
  0x10   : > { %p1372_p13 = pnand %p1371_p12, %p1365_p9 }
  0x12   : > { %1375 = shalt.err (!%p1372_p13)
}
  0x13   : > { %s1388_s17 = smov [#allocation2]   ;;  %126 = sbr.rel (%p1415_p2) target bundleno = 199 (0xc7), region = 28 }
  0x14   : > { %1349 = dma.vmem_to_smem (!%p1347_p5), %s105_s13, 32, %s1388_s17, [#allocation3]  }
  0x1a   : > { %1381 = dma.done.wait (%p1419_p3), [#allocation3], 32  }
  0x1b   : > { %1383 = vsyncadd (%p1419_p3), [#allocation3], 4294967264 }
  0x1c   : > { %132 = sfence }
  0x1d   : > { %s1132_s18 = sshll.u32 %s1125_s10, 2  ;;  %s164_s19 = sld [smem:[#allocation2]]  ;;  %vm1032_vm0 = vcmask 1040384   ;;  %vm1037_vm1 = vcmask 1041408   ;;  %vm1042_vm2 = vcmask 1042432  }
  0x1e   : > { %p150_p0 = scmp.lt.s32.totalorder %s1132_s18, 7  ;;  %s1137_s20 = sld [smem:[#allocation2 + $0x8]] }
  0x1f   : > { %s1138_s21 = sld [smem:[#allocation2 + $0x10]]  ;;  %s1139_s22 = sld [smem:[#allocation2 + $0x1]] }
  0x20   : > { %s2283_s18 = smov (!%p150_p0, %s1132_s18), 7  ;;  %s1140_s23 = sld [smem:[#allocation2 + $0x9]] }
  0x21   : > { %s1435_s24 = sld [smem:[#allocation2 + $0x11]]  ;;  %s1133_s25 = sshll.u32 %s2283_s18, 1 }
  0x22   : > { %s153_s28 = scalar_lea.vmem %s2278_s1, %s1133_s25  ;;  %s1142_s29 = sld [smem:[#allocation2 + $0x2]] }
  0x23   : > { %v165_v0 = vstv %s164_s19  ;;  %v1441_v1 = vld [vmem:[%s153_s28] ss:$2 sm:$0xf]  ;;  %v1443_v2 = vld [vmem:[%s153_s28 + $0x1] ss:$2 sm:$0xf] }
  0x24   : > { %v168_v3 = vstv %s1137_s20  ;;  %v166_v4 = vmul.f32 %v165_v0, %v1441_v1  ;;  %s1143_s30 = sld [smem:[#allocation2 + $0xa]]  ;;  %s1450_s4 = sld [smem:[#allocation2 + $0x3]] }
  0x25   : > { %v169_v5 = vmul.f32 %v1443_v2, %v168_v3  ;;  %v176_v6 = vstv %s1139_s22  ;;  %v172_v7 = vstv %s1138_s21  ;;  %s1448_s3 = sld [smem:[#allocation2 + $0x12]]  ;;  %s1452_s5 = sld [smem:[#allocation2 + $0xb]] }
  0x26   : > { %v177_v8 = vmul.f32 %v176_v6, %v1441_v1  ;;  %v179_v10 = vstv %s1140_s23  ;;  %s1454_s6 = sld [smem:[#allocation2 + $0x13]]  ;;  %s1457_s7 = sld [smem:[#allocation2 + $0x4]] }
  0x27   : > { %v170_v9 = vadd.f32 %v169_v5, %v166_v4  ;;  %v180_v11 = vmul.f32 %v1443_v2, %v179_v10  ;;  %s1459_s8 = sld [smem:[#allocation2 + $0xc]]  ;;  %v183_v13 = vstv %s1435_s24  ;;  %s1464_s11 = sld [smem:[#allocation2 + $0x5]] }
  0x28   : > { %s1462_s10 = sld [smem:[#allocation2 + $0x14]]  ;;  %s1466_s12 = sld [smem:[#allocation2 + $0xd]]  ;;  %v187_v15 = vstv %s1142_s29 }
  0x29   : > { %v173_v12 = vadd.f32 %v172_v7, %v170_v9  ;;  %v181_v14 = vadd.f32 %v180_v11, %v177_v8  ;;  %s1468_s13 = sld [smem:[#allocation2 + $0x15]]  ;;  %s1470_s14 = sld [smem:[#allocation2 + $0x6]]  ;;  %v188_v19 = vmul.f32 %v187_v15, %v1441_v1 }
  0x2a   : > { %v190_v16 = vstv %s1143_s30  ;;  %s1472_s15 = sld [smem:[#allocation2 + $0xe]]  ;;  %s1480_s17 = sld [smem:[#allocation2 + $0x7]]  ;;  %v198_v22 = vstv %s1450_s4 }
  0x2b   : > { %v1474_v17 = vmax.f32 %v173_v12, 0.0  ;;  %v184_v18 = vadd.f32 %v183_v13, %v181_v14  ;;  %v191_v20 = vmul.f32 %v1443_v2, %v190_v16  ;;  %s1478_s16 = sld [smem:[#allocation2 + $0x16]]  ;;  %v194_v21 = vstv %s1448_s3  ;;  %s1486_s19 = sld [smem:[#allocation2 + $0xf]] }
  0x2c   : > { %v201_v23 = vstv %s1452_s5  ;;  %v205_v24 = vstv %s1454_s6  ;;  %s1488_s20 = sld [smem:[#allocation2 + $0x17]]  ;;  %v199_v27 = vmul.f32 %v198_v22, %v1441_v1  ;;  %s1494_s21 = sld [smem:[#allocation2 + $0x18]]  ;;  %v209_v29 = vstv %s1457_s7 }
  0x2d   : > { %v1490_v25 = vmax.f32 %v184_v18, 0.0  ;;  %v192_v26 = vadd.f32 %v191_v20, %v188_v19  ;;  %v202_v28 = vmul.f32 %v1443_v2, %v201_v23  ;;  %s1496_s22 = sld [smem:[#allocation2 + $0x20]]  ;;  %v212_v30 = vstv %s1459_s8  ;;  %s1530_s29 = sld [smem:[#allocation2 + $0x19]] }
  0x2e   : > { %v216_v31 = vstv %s1462_s10  ;;  %v220_v32 = vstv %s1464_s11  ;;  %s1502_s23 = sld [smem:[#allocation2 + $0x28]]  ;;  %v210_v35 = vmul.f32 %v209_v29, %v1441_v1  ;;  %v213_v36 = vmul.f32 %v1443_v2, %v212_v30  ;;  %s1532_s30 = sld [smem:[#allocation2 + $0x21]] }
  0x2f   : > { %s1504_s24 = sld [smem:[#allocation2 + $0x30]]  ;;  %v195_v33 = vadd.f32 %v194_v21, %v192_v26  ;;  %v203_v34 = vadd.f32 %v202_v28, %v199_v27  ;;  %v221_v37 = vmul.f32 %v220_v32, %v1441_v1  ;;  %v223_v38 = vstv %s1466_s12  ;;  %s1538_s3 = sld [smem:[#allocation2 + $0x29]] }
  0x30   : > { %v227_v39 = vstv %s1468_s13  ;;  %v231_v40 = vstv %s1470_s14  ;;  %s1512_s25 = sld [smem:[#allocation2 + $0x38]]  ;;  %v214_v43 = vadd.f32 %v213_v36, %v210_v35  ;;  %v224_v44 = vmul.f32 %v1443_v2, %v223_v38  ;;  %s1540_s4 = sld [smem:[#allocation2 + $0x31]] }
  0x31   : > { %s1514_s26 = sld [smem:[#allocation2 + $0x40]]  ;;  %v1516_v41 = vmax.f32 %v195_v33, 0.0  ;;  %v206_v42 = vadd.f32 %v205_v24, %v203_v34  ;;  %v232_v45 = vmul.f32 %v231_v40, %v1441_v1  ;;  %v234_v46 = vstv %s1472_s15  ;;  %s1547_s6 = sld [smem:[#allocation2 + $0x39]] }
  0x32   : > { %v238_v47 = vstv %s1478_s16  ;;  %v242_v48 = vstv %s1480_s17  ;;  %s1523_s27 = sld [smem:[#allocation2 + $0x48]]  ;;  %v217_v50 = vadd.f32 %v216_v31, %v214_v43  ;;  %v225_v51 = vadd.f32 %v224_v44, %v221_v37  ;;  %s1553_s7 = sld [smem:[#allocation2 + $0x41]] }
  0x33   : > { %s1525_s28 = sld [smem:[#allocation2 + $0x50]]  ;;  %v1527_v49 = vmax.f32 %v206_v42, 0.0  ;;  %v235_v52 = vmul.f32 %v1443_v2, %v234_v46  ;;  %v243_v53 = vmul.f32 %v242_v48, %v1441_v1  ;;  %v245_v54 = vstv %s1486_s19  ;;  %s1555_s8 = sld [smem:[#allocation2 + $0x49]] }
  0x34   : > { %v249_v55 = vstv %s1488_s20  ;;  %v253_v56 = vstv %s1494_s21  ;;  %v1542_v57 = vmax.f32 %v217_v50, 0.0  ;;  %v228_v58 = vadd.f32 %v227_v39, %v225_v51  ;;  %s1545_s5 = sld [smem:[#allocation2 + $0x58]]  ;;  %s1563_s10 = sld [smem:[#allocation2 + $0x51]] }
  0x35   : > { %v236_v59 = vadd.f32 %v235_v52, %v232_v45  ;;  %v246_v60 = vmul.f32 %v1443_v2, %v245_v54  ;;  %v254_v61 = vmul.f32 %v253_v56, %v1474_v17  ;;  %v256_v62 = vstv %s1496_s22  ;;  %s1565_s11 = sld [smem:[#allocation2 + $0x1a]]  ;;  %s1585_s16 = sld [smem:[#allocation2 + $0x59]] }
  0x36   : > { %v260_v63 = vstv %s1502_s23  ;;  %v264_v0 = vstv %s1504_s24  ;;  %v1557_v1 = vmax.f32 %v228_v58, 0.0  ;;  %v257_v2 = vmul.f32 %v256_v62, %v1490_v25  ;;  %s1568_s12 = sld [smem:[#allocation2 + $0x22]]  ;;  %s1602_s20 = sld [smem:[#allocation2 + $0x1b]] }
  0x37   : > { %v239_v3 = vadd.f32 %v238_v47, %v236_v59  ;;  %v247_v4 = vadd.f32 %v246_v60, %v243_v53  ;;  %v261_v5 = vmul.f32 %v260_v63, %v1516_v41  ;;  %v268_v6 = vstv %s1512_s25  ;;  %s1570_s13 = sld [smem:[#allocation2 + $0x2a]]  ;;  %s1608_s22 = sld [smem:[#allocation2 + $0x23]] }
  0x38   : > { %v272_v7 = vstv %s1514_s26  ;;  %v258_v9 = vadd.f32 %v257_v2, %v254_v61  ;;  %v265_v10 = vmul.f32 %v264_v0, %v1527_v49  ;;  %v269_v12 = vmul.f32 %v268_v6, %v1542_v57  ;;  %s1577_s14 = sld [smem:[#allocation2 + $0x32]]  ;;  %s1614_s23 = sld [smem:[#allocation2 + $0x2b]] }
  0x39   : > { %v250_v8 = vadd.f32 %v249_v55, %v247_v4  ;;  %v1572_v11 = vmax.f32 %v239_v3, 0.0  ;;  %v273_v13 = vmul.f32 %v272_v7, %v1557_v1  ;;  %v276_v14 = vstv %s1523_s27  ;;  %s1579_s15 = sld [smem:[#allocation2 + $0x3a]]  ;;  %s1616_s24 = sld [smem:[#allocation2 + $0x33]] }
  0x3a   : > { %v262_v16 = vadd.f32 %v261_v5, %v258_v9  ;;  %v280_v18 = vstv %s1525_s28  ;;  %v288_v19 = vstv %s1530_s29  ;;  %v291_v21 = vstv %s1532_s30  ;;  %s1591_s17 = sld [smem:[#allocation2 + $0x42]]  ;;  %s1626_s26 = sld [smem:[#allocation2 + $0x3b]] }
  0x3b   : > { %v1581_v15 = vmax.f32 %v250_v8, 0.0  ;;  %v289_v20 = vmul.f32 %v288_v19, %v1474_v17  ;;  %v295_v22 = vstv %s1538_s3  ;;  %v299_v23 = vstv %s1540_s4  ;;  %s1593_s19 = sld [smem:[#allocation2 + $0x4a]]  ;;  %s1628_s27 = sld [smem:[#allocation2 + $0x43]] }
  0x3c   : > { %v266_v24 = vadd.f32 %v265_v10, %v262_v16  ;;  %v284_v26 = vstv %s1545_s5  ;;  %v292_v27 = vmul.f32 %v291_v21, %v1490_v25  ;;  %v296_v28 = vmul.f32 %v295_v22, %v1516_v41  ;;  %s1606_s21 = sld [smem:[#allocation2 + $0x52]]  ;;  %s1636_s28 = sld [smem:[#allocation2 + $0x4b]] }
  0x3d   : > { %v277_v29 = vmul.f32 %v276_v14, %v1572_v11  ;;  %v303_v30 = vstv %s1547_s6  ;;  %v307_v31 = vstv %s1553_s7  ;;  %v311_v32 = vstv %s1555_s8  ;;  %s1620_s25 = sld [smem:[#allocation2 + $0x5a]]  ;;  %s1638_s29 = sld [smem:[#allocation2 + $0x53]] }
  0x3e   : > { %v270_v33 = vadd.f32 %v269_v12, %v266_v24  ;;  %v281_v34 = vmul.f32 %v280_v18, %v1581_v15  ;;  %v293_v35 = vadd.f32 %v292_v27, %v289_v20  ;;  %v300_v36 = vmul.f32 %v299_v23, %v1527_v49  ;;  %s1641_s30 = sld [smem:[#allocation2 + $0x5b]]  ;;  %s1643_s3 = sld [smem:[#allocation2 + $0x1c]] }
  0x3f   : > { %v304_v37 = vmul.f32 %v303_v30, %v1542_v57  ;;  %v308_v38 = vmul.f32 %v307_v31, %v1557_v1  ;;  %v312_v39 = vmul.f32 %v311_v32, %v1572_v11  ;;  %v323_v40 = vstv %s1565_s11  ;;  %s1649_s4 = sld [smem:[#allocation2 + $0x24]] }
  0x40   : > { %v274_v42 = vadd.f32 %v273_v13, %v270_v33  ;;  %v297_v43 = vadd.f32 %v296_v28, %v293_v35  ;;  %v315_v44 = vstv %s1563_s10  ;;  %v324_v45 = vmul.f32 %v323_v40, %v1474_v17  ;;  %s1651_s5 = sld [smem:[#allocation2 + $0x2c]] }
  0x41   : > { %v326_v46 = vstv %s1568_s12  ;;  %v330_v47 = vstv %s1570_s13  ;;  %v334_v48 = vstv %s1577_s14  ;;  %v338_v50 = vstv %s1579_s15  ;;  %s1658_s6 = sld [smem:[#allocation2 + $0x34]]  ;;  %s1680_s12 = sld [smem:[#allocation2 + $0x1d]] }
  0x42   : > { %v278_v51 = vadd.f32 %v277_v29, %v274_v42  ;;  %v301_v52 = vadd.f32 %v300_v36, %v297_v43  ;;  %v327_v53 = vmul.f32 %v326_v46, %v1490_v25  ;;  %v331_v54 = vmul.f32 %v330_v47, %v1516_v41  ;;  %s1660_s7 = sld [smem:[#allocation2 + $0x3c]]  ;;  %s1684_s13 = sld [smem:[#allocation2 + $0x25]] }
  0x43   : > { %v316_v55 = vmul.f32 %v315_v44, %v1581_v15  ;;  %v319_v56 = vstv %s1585_s16  ;;  %v342_v58 = vstv %s1591_s17  ;;  %v346_v59 = vstv %s1593_s19  ;;  %s1664_s8 = sld [smem:[#allocation2 + $0x44]]  ;;  %s1689_s14 = sld [smem:[#allocation2 + $0x2d]] }
  0x44   : > { %v282_v60 = vadd.f32 %v281_v34, %v278_v51  ;;  %v305_v61 = vadd.f32 %v304_v37, %v301_v52  ;;  %v328_v62 = vadd.f32 %v327_v53, %v324_v45  ;;  %v335_v63 = vmul.f32 %v334_v48, %v1527_v49  ;;  %s1670_s10 = sld [smem:[#allocation2 + $0x4c]]  ;;  %s1691_s15 = sld [smem:[#allocation2 + $0x35]] }
  0x45   : > { %v339_v0 = vmul.f32 %v338_v50, %v1542_v57  ;;  %v343_v3 = vmul.f32 %v342_v58, %v1557_v1  ;;  %v347_v4 = vmul.f32 %v346_v59, %v1572_v11  ;;  %v358_v2 = vstv %s1602_s20  ;;  %s1672_s11 = sld [smem:[#allocation2 + $0x54]]  ;;  %s1697_s17 = sld [smem:[#allocation2 + $0x3d]] }
  0x46   : > { %v285_v5 = vadd.f32 %v284_v26, %v282_v60  ;;  %v309_v6 = vadd.f32 %v308_v38, %v305_v61  ;;  %v332_v7 = vadd.f32 %v331_v54, %v328_v62  ;;  %v350_v8 = vstv %s1606_s21  ;;  %s1695_s16 = sld [smem:[#allocation2 + $0x5c]]  ;;  %s1703_s19 = sld [smem:[#allocation2 + $0x45]] }
  0x47   : > { %v359_v9 = vmul.f32 %v358_v2, %v1474_v17  ;;  %v361_v10 = vstv %s1608_s22  ;;  %v365_v12 = vstv %s1614_s23  ;;  %v369_v13 = vstv %s1616_s24  ;;  %s1707_s20 = sld [smem:[#allocation2 + $0x4d]]  ;;  %s1717_s22 = sld [smem:[#allocation2 + $0x1e]] }
  0x48   : > { %v313_v14 = vadd.f32 %v312_v39, %v309_v6  ;;  %v336_v16 = vadd.f32 %v335_v63, %v332_v7  ;;  %v354_v18 = vstv %s1620_s25  ;;  %v362_v19 = vmul.f32 %v361_v10, %v1490_v25  ;;  %s1709_s21 = sld [smem:[#allocation2 + $0x55]]  ;;  %s1719_s23 = sld [smem:[#allocation2 + $0x26]] }
  0x49   : > { %v351_v20 = vmul.f32 %v350_v8, %v1581_v15  ;;  %v366_v21 = vmul.f32 %v365_v12, %v1516_v41  ;;  %v373_v22 = vstv %s1626_s26  ;;  %v377_v23 = vstv %s1628_s27  ;;  %s1724_s24 = sld [smem:[#allocation2 + $0x2e]] }
  0x4a   : > { %v317_v24 = vadd.f32 %v316_v55, %v313_v14  ;;  %v340_v26 = vadd.f32 %v339_v0, %v336_v16  ;;  %v363_v27 = vadd.f32 %v362_v19, %v359_v9  ;;  %v370_v28 = vmul.f32 %v369_v13, %v1527_v49  ;;  %s1726_s25 = sld [smem:[#allocation2 + $0x36]] }
  0x4b   : > { %v1675_v29 = vmax.f32 %v285_v5, 0.0  ;;  %v374_v30 = vmul.f32 %v373_v22, %v1542_v57  ;;  %v378_v31 = vmul.f32 %v377_v23, %v1557_v1  ;;  %v381_v32 = vstv %s1636_s28  ;;  %s1731_s26 = sld [smem:[#allocation2 + $0x3e]]  ;;  %s1741_s28 = sld [smem:[#allocation2 + $0x5d]] }
  0x4c   : > { %v344_v33 = vadd.f32 %v343_v3, %v340_v26  ;;  %v367_v34 = vadd.f32 %v366_v21, %v363_v27  ;;  %v385_v35 = vstv %s1638_s29  ;;  %v389_v36 = vstv %s1641_s30  ;;  %s1733_s27 = sld [smem:[#allocation2 + $0x46]]  ;;  %s1767_s30 = sld [smem:[#allocation2 + $0x2f]] }
  0x4d   : > { %v320_v37 = vadd.f32 %v319_v56, %v317_v24  ;;  %v393_v38 = vstv %s1643_s3  ;;  %v396_v39 = vstv %s1649_s4  ;;  %v400_v40 = vstv %s1651_s5  ;;  %s1743_s29 = sld [smem:[#allocation2 + $0x4e]]  ;;  %s1752_s3 = sld [smem:[#allocation2 + $0x1f]] }
  0x4e   : > { %v348_v42 = vadd.f32 %v347_v4, %v344_v33  ;;  %v371_v43 = vadd.f32 %v370_v28, %v367_v34  ;;  %v382_v44 = vmul.f32 %v381_v32, %v1572_v11  ;;  %v394_v45 = vmul.f32 %v393_v38, %v1474_v17  ;;  %s1754_s4 = sld [smem:[#allocation2 + $0x27]]  ;;  %s1759_s5 = sld [smem:[#allocation2 + $0x56]] }
  0x4f   : > { %v397_v46 = vmul.f32 %v396_v39, %v1490_v25  ;;  %v401_v47 = vmul.f32 %v400_v40, %v1516_v41  ;;  %v404_v48 = vstv %s1658_s6  ;;  %v408_v50 = vstv %s1660_s7  ;;  %s1761_s6 = sld [smem:[#allocation2 + $0x5e]]  ;;  %s1769_s7 = sld [smem:[#allocation2 + $0x37]] }
  0x50   : > { %v352_v51 = vadd.f32 %v351_v20, %v348_v42  ;;  %v375_v52 = vadd.f32 %v374_v30, %v371_v43  ;;  %v386_v53 = vmul.f32 %v385_v35, %v1581_v15  ;;  %v405_v54 = vmul.f32 %v404_v48, %v1527_v49 }
  0x51   : > { %v398_v55 = vadd.f32 %v397_v46, %v394_v45  ;;  %v412_v56 = vstv %s1664_s8  ;;  %v416_v58 = vstv %s1670_s10  ;;  %v420_v59 = vstv %s1672_s11  ;;  %s1773_s8 = sld [smem:[#allocation2 + $0x3f]] }
  0x52   : > { %v1714_v60 = vmax.f32 %v320_v37, 0.0  ;;  %v355_v61 = vadd.f32 %v354_v18, %v352_v51  ;;  %v379_v62 = vadd.f32 %v378_v31, %v375_v52  ;;  %v409_v63 = vmul.f32 %v408_v50, %v1542_v57  ;;  %s1779_s10 = sld [smem:[#allocation2 + $0x47]] }
  0x53   : > { %v402_v0 = vadd.f32 %v401_v47, %v398_v55  ;;  %v413_v3 = vmul.f32 %v412_v56, %v1557_v1  ;;  %v417_v4 = vmul.f32 %v416_v58, %v1572_v11  ;;  %v428_v2 = vstv %s1680_s12  ;;  %s1781_s11 = sld [smem:[#allocation2 + $0x4f]] }
  0x54   : > { %v383_v5 = vadd.f32 %v382_v44, %v379_v62  ;;  %v421_v6 = vmul.f32 %v420_v59, %v1581_v15  ;;  %v429_v7 = vmul.f32 %v428_v2, %v1474_v17  ;;  %v431_v8 = vstv %s1684_s13  ;;  %s1791_s12 = sld [smem:[#allocation2 + $0x57]]  ;;  %s1793_s13 = sld [smem:[#allocation2 + $0x60]] }
  0x55   : > { %v406_v9 = vadd.f32 %v405_v54, %v402_v0  ;;  %v432_v10 = vmul.f32 %v431_v8, %v1490_v25  ;;  %v435_v12 = vstv %s1689_s14  ;;  %v439_v13 = vstv %s1691_s15  ;;  %s1798_s14 = sld [smem:[#allocation2 + $0x68]] }
  0x56   : > { %v387_v14 = vadd.f32 %v386_v53, %v383_v5  ;;  %v424_v16 = vstv %s1695_s16  ;;  %v436_v18 = vmul.f32 %v435_v12, %v1516_v41  ;;  %v443_v19 = vstv %s1697_s17  ;;  %s1800_s15 = sld [smem:[#allocation2 + $0x70]]  ;;  %s1804_s16 = sld [smem:[#allocation2 + $0x5f]] }
  0x57   : > { %v410_v20 = vadd.f32 %v409_v63, %v406_v9  ;;  %v433_v21 = vadd.f32 %v432_v10, %v429_v7  ;;  %v440_v22 = vmul.f32 %v439_v13, %v1527_v49  ;;  %v447_v23 = vstv %s1703_s19  ;;  %s1806_s17 = sld [smem:[#allocation2 + $0x78]] }
  0x58   : > { %v1747_v24 = vmax.f32 %v355_v61, 0.0  ;;  %v444_v26 = vmul.f32 %v443_v19, %v1542_v57  ;;  %v451_v27 = vstv %s1707_s20  ;;  %v455_v28 = vstv %s1709_s21  ;;  %s1812_s19 = sld [smem:[#allocation2 + $0x80]] }
  0x59   : > { %v390_v30 = vadd.f32 %v389_v36, %v387_v14  ;;  %v414_v31 = vadd.f32 %v413_v3, %v410_v20  ;;  %v437_v32 = vadd.f32 %v436_v18, %v433_v21  ;;  %v448_v33 = vmul.f32 %v447_v23, %v1557_v1  ;;  %s1814_s20 = sld [smem:[#allocation2 + $0x88]] }
  0x5a   : > { %v452_v34 = vmul.f32 %v451_v27, %v1572_v11  ;;  %v456_v35 = vmul.f32 %v455_v28, %v1581_v15  ;;  %v463_v37 = vstv %s1717_s22  ;;  %v466_v38 = vstv %s1719_s23  ;;  %s1821_s21 = sld [smem:[#allocation2 + $0x90]]  ;;  %s1826_s22 = sld [smem:[#allocation2 + $0x61]] }
  0x5b   : > { %v418_v36 = vadd.f32 %v417_v4, %v414_v31  ;;  %v441_v39 = vadd.f32 %v440_v22, %v437_v32  ;;  %v464_v40 = vmul.f32 %v463_v37, %v1474_v17  ;;  %v467_v42 = vmul.f32 %v466_v38, %v1490_v25  ;;  %s1828_s23 = sld [smem:[#allocation2 + $0x69]] }
  0x5c   : > { %v470_v43 = vstv %s1724_s24  ;;  %v474_v44 = vstv %s1726_s25  ;;  %v478_v45 = vstv %s1731_s26  ;;  %v482_v46 = vstv %s1733_s27  ;;  %s1833_s24 = sld [smem:[#allocation2 + $0x71]]  ;;  %s1839_s25 = sld [smem:[#allocation2 + $0x98]] }
  0x5d   : > { %v422_v47 = vadd.f32 %v421_v6, %v418_v36  ;;  %v445_v48 = vadd.f32 %v444_v26, %v441_v39  ;;  %v468_v50 = vadd.f32 %v467_v42, %v464_v40  ;;  %v471_v51 = vmul.f32 %v470_v43, %v1516_v41  ;;  %s1841_s26 = sld [smem:[#allocation2 + $0x79]] }
  0x5e   : > { %v1784_v52 = vmax.f32 %v390_v30, 0.0  ;;  %v459_v53 = vstv %s1741_s28  ;;  %v475_v54 = vmul.f32 %v474_v44, %v1527_v49  ;;  %v486_v55 = vstv %s1743_s29  ;;  %s1846_s27 = sld [smem:[#allocation2 + $0x81]]  ;;  %s1851_s28 = sld [smem:[#allocation2 + $0xa0]] }
  0x5f   : > { %v449_v56 = vadd.f32 %v448_v33, %v445_v48  ;;  %v472_v58 = vadd.f32 %v471_v51, %v468_v50  ;;  %v479_v59 = vmul.f32 %v478_v45, %v1542_v57  ;;  %v483_v61 = vmul.f32 %v482_v46, %v1557_v1  ;;  %s1853_s29 = sld [smem:[#allocation2 + $0x89]] }
  0x60   : > { %v425_v62 = vadd.f32 %v424_v16, %v422_v47  ;;  %v487_v63 = vmul.f32 %v486_v55, %v1572_v11  ;;  %v498_v0 = vstv %s1752_s3  ;;  %v501_v3 = vstv %s1754_s4  ;;  %s1858_s3 = sld [smem:[#allocation2 + $0x91]] }
  0x61   : > { %v453_v4 = vadd.f32 %v452_v34, %v449_v56  ;;  %v476_v2 = vadd.f32 %v475_v54, %v472_v58  ;;  %v490_v5 = vstv %s1759_s5  ;;  %v494_v6 = vstv %s1761_s6  ;;  %s1862_s4 = sld [smem:[#allocation2 + $0x99]]  ;;  %s1864_s5 = sld [smem:[#allocation2 + $0x62]] }
  0x62   : > { %v499_v7 = vmul.f32 %v498_v0, %v1474_v17  ;;  %v502_v8 = vmul.f32 %v501_v3, %v1490_v25  ;;  %v505_v9 = vstv %s1767_s30  ;;  %v509_v10 = vstv %s1769_s7  ;;  %s1869_s6 = sld [smem:[#allocation2 + $0x6a]] }
  0x63   : > { %v457_v12 = vadd.f32 %v456_v35, %v453_v4  ;;  %v480_v13 = vadd.f32 %v479_v59, %v476_v2  ;;  %v506_v14 = vmul.f32 %v505_v9, %v1516_v41  ;;  %v510_v16 = vmul.f32 %v509_v10, %v1527_v49  ;;  %s1875_s30 = sld [smem:[#allocation2 + $0x72]] }
  0x64   : > { %v503_v18 = vadd.f32 %v502_v8, %v499_v7  ;;  %v513_v19 = vstv %s1773_s8  ;;  %v517_v20 = vstv %s1779_s10  ;;  %v521_v21 = vstv %s1781_s11  ;;  %s1877_s7 = sld [smem:[#allocation2 + $0x7a]]  ;;  %s1894_s11 = sld [smem:[#allocation2 + $0xa1]] }
  0x65   : > { %v1823_v17 = vmax.f32 %v425_v62, 0.0  ;;  %v460_v25 = vadd.f32 %v459_v53, %v457_v12  ;;  %v484_v22 = vadd.f32 %v483_v61, %v480_v13  ;;  %v491_v23 = vmul.f32 %v490_v5, %v1581_v15  ;;  %s1885_s8 = sld [smem:[#allocation2 + $0x82]] }
  0x66   : > { %v507_v41 = vadd.f32 %v506_v14, %v503_v18  ;;  %v514_v49 = vmul.f32 %v513_v19, %v1542_v57  ;;  %v518_v26 = vmul.f32 %v517_v20, %v1557_v1  ;;  %v522_v27 = vmul.f32 %v521_v21, %v1572_v11  ;;  %s1887_s10 = sld [smem:[#allocation2 + $0x8a]] }
  0x67   : > { %v1835_v28 = vmax.f32 %v460_v25, 0.0  ;;  %v488_v30 = vadd.f32 %v487_v63, %v484_v22  ;;  %v525_v31 = vstv %s1791_s12  ;;  %v533_v32 = vstv %s1793_s13  ;;  %s1896_s12 = sld [smem:[#allocation2 + $0x92]] }
  0x68   : > { %v511_v57 = vadd.f32 %v510_v16, %v507_v41  ;;  %v534_v1 = vmul.f32 %v533_v32, %v1675_v29  ;;  %v536_v33 = vstv %s1798_s14  ;;  %v540_v11 = vstv %s1800_s15  ;;  %s1900_s13 = sld [smem:[#allocation2 + $0x9a]]  ;;  %s1902_s14 = sld [smem:[#allocation2 + $0x63]] }
  0x69   : > { %v492_v34 = vadd.f32 %v491_v23, %v488_v30  ;;  %v537_v35 = vmul.f32 %v536_v33, %v1714_v60  ;;  %v541_v37 = vmul.f32 %v540_v11, %v1747_v24  ;;  %v544_v38 = vstv %s1806_s17  ;;  %s1907_s15 = sld [smem:[#allocation2 + $0x6b]] }
  0x6a   : > { %v515_v36 = vadd.f32 %v514_v49, %v511_v57  ;;  %v529_v39 = vstv %s1804_s16  ;;  %v548_v40 = vstv %s1812_s19  ;;  %v552_v42 = vstv %s1814_s20  ;;  %s1909_s16 = sld [smem:[#allocation2 + $0x73]]  ;;  %s1925_s20 = sld [smem:[#allocation2 + $0xa2]] }
  0x6b   : > { %v495_v43 = vadd.f32 %v494_v6, %v492_v34  ;;  %v526_v44 = vmul.f32 %v525_v31, %v1581_v15  ;;  %v538_v45 = vadd.f32 %v537_v35, %v534_v1  ;;  %v545_v46 = vmul.f32 %v544_v38, %v1784_v52  ;;  %s1918_s17 = sld [smem:[#allocation2 + $0x7b]] }
  0x6c   : > { %v519_v47 = vadd.f32 %v518_v26, %v515_v36  ;;  %v549_v48 = vmul.f32 %v548_v40, %v1823_v17  ;;  %v553_v50 = vmul.f32 %v552_v42, %v1835_v28  ;;  %v556_v51 = vstv %s1821_s21  ;;  %s1920_s19 = sld [smem:[#allocation2 + $0x83]] }
  0x6d   : > { %v1871_v53 = vmax.f32 %v495_v43, 0.0  ;;  %v542_v15 = vadd.f32 %v541_v37, %v538_v45  ;;  %v568_v54 = vstv %s1826_s22  ;;  %v571_v55 = vstv %s1828_s23  ;;  %s1930_s21 = sld [smem:[#allocation2 + $0x8b]] }
  0x6e   : > { %v523_v56 = vadd.f32 %v522_v27, %v519_v47  ;;  %v569_v58 = vmul.f32 %v568_v54, %v1675_v29  ;;  %v572_v59 = vmul.f32 %v571_v55, %v1714_v60  ;;  %v575_v61 = vstv %s1833_s24  ;;  %s1933_s22 = sld [smem:[#allocation2 + $0x93]]  ;;  %s1940_s24 = sld [smem:[#allocation2 + $0x64]] }
  0x6f   : > { %v546_v62 = vadd.f32 %v545_v46, %v542_v15  ;;  %v560_v63 = vstv %s1839_s25  ;;  %v576_v0 = vmul.f32 %v575_v61, %v1747_v24  ;;  %v579_v3 = vstv %s1841_s26  ;;  %s1935_s23 = sld [smem:[#allocation2 + $0x9b]]  ;;  %s1944_s25 = sld [smem:[#allocation2 + $0x6c]] }
  0x70   : > { %v527_v4 = vadd.f32 %v526_v44, %v523_v56  ;;  %v573_v2 = vadd.f32 %v572_v59, %v569_v58  ;;  %v580_v5 = vmul.f32 %v579_v3, %v1784_v52  ;;  %v583_v6 = vstv %s1846_s27  ;;  %s1946_s26 = sld [smem:[#allocation2 + $0x74]] }
  0x71   : > { %v550_v7 = vadd.f32 %v549_v48, %v546_v62  ;;  %v557_v8 = vmul.f32 %v556_v51, %v1871_v53  ;;  %v564_v9 = vstv %s1851_s28  ;;  %v587_v10 = vstv %s1853_s29  ;;  %s1951_s27 = sld [smem:[#allocation2 + $0x7c]] }
  0x72   : > { %v530_v12 = vadd.f32 %v529_v39, %v527_v4  ;;  %v577_v13 = vadd.f32 %v576_v0, %v573_v2  ;;  %v584_v14 = vmul.f32 %v583_v6, %v1823_v17  ;;  %v591_v16 = vstv %s1858_s3  ;;  %s1956_s28 = sld [smem:[#allocation2 + $0x84]]  ;;  %s1963_s3 = sld [smem:[#allocation2 + $0xa3]] }
  0x73   : > { %v554_v18 = vadd.f32 %v553_v50, %v550_v7  ;;  %v588_v19 = vmul.f32 %v587_v10, %v1835_v28  ;;  %v595_v20 = vstv %s1862_s4  ;;  %v603_v21 = vstv %s1864_s5  ;;  %s1958_s29 = sld [smem:[#allocation2 + $0x8c]] }
  0x74   : > { %v1911_v25 = vmax.f32 %v530_v12, 0.0  ;;  %v581_v22 = vadd.f32 %v580_v5, %v577_v13  ;;  %v604_v23 = vmul.f32 %v603_v21, %v1675_v29  ;;  %v606_v41 = vstv %s1869_s6  ;;  %s1967_s4 = sld [smem:[#allocation2 + $0x94]] }
  0x75   : > { %v558_v49 = vadd.f32 %v557_v8, %v554_v18  ;;  %v607_v26 = vmul.f32 %v606_v41, %v1714_v60  ;;  %v610_v27 = vstv %s1875_s30  ;;  %v614_v30 = vstv %s1877_s7  ;;  %s1969_s5 = sld [smem:[#allocation2 + $0x9c]]  ;;  %s1977_s30 = sld [smem:[#allocation2 + $0x65]] }
  0x76   : > { %v561_v31 = vmul.f32 %v560_v63, %v1911_v25  ;;  %v585_v32 = vadd.f32 %v584_v14, %v581_v22  ;;  %v592_v57 = vmul.f32 %v591_v16, %v1871_v53  ;;  %v611_v1 = vmul.f32 %v610_v27, %v1747_v24  ;;  %s1975_s6 = sld [smem:[#allocation2 + $0xa4]]  ;;  %s1982_s7 = sld [smem:[#allocation2 + $0x6d]] }
  0x77   : > { %v608_v33 = vadd.f32 %v607_v26, %v604_v23  ;;  %v615_v11 = vmul.f32 %v614_v30, %v1784_v52  ;;  %v618_v34 = vstv %s1885_s8  ;;  %v622_v35 = vstv %s1887_s10  ;;  %s1984_s8 = sld [smem:[#allocation2 + $0x75]] }
  0x78   : > { %v562_v37 = vadd.f32 %v561_v31, %v558_v49  ;;  %v589_v38 = vadd.f32 %v588_v19, %v585_v32  ;;  %v596_v36 = vmul.f32 %v595_v20, %v1911_v25  ;;  %v599_v39 = vstv %s1894_s11  ;;  %s1990_s10 = sld [smem:[#allocation2 + $0x7d]] }
  0x79   : > { %v612_v40 = vadd.f32 %v611_v1, %v608_v33  ;;  %v619_v42 = vmul.f32 %v618_v34, %v1823_v17  ;;  %v626_v43 = vstv %s1896_s12  ;;  %v623_v46 = vmul.f32 %v622_v35, %v1835_v28  ;;  %s1995_s11 = sld [smem:[#allocation2 + $0x85]] }
  0x7a   : > { %v565_v44 = vadd.f32 %v564_v9, %v562_v37  ;;  %v593_v45 = vadd.f32 %v592_v57, %v589_v38  ;;  %v630_v47 = vstv %s1900_s13  ;;  %v638_v50 = vstv %s1902_s14  ;;  %s1997_s12 = sld [smem:[#allocation2 + $0x8d]] }
  0x7b   : > { %v616_v48 = vadd.f32 %v615_v11, %v612_v40  ;;  %v641_v51 = vstv %s1907_s15  ;;  %v645_v15 = vstv %s1909_s16  ;;  %v627_v55 = vmul.f32 %v626_v43, %v1871_v53  ;;  %s2005_s13 = sld [smem:[#allocation2 + $0x95]]  ;;  %s2014_s15 = sld [smem:[#allocation2 + $0x66]] }
  0x7c   : > { %v597_v54 = vadd.f32 %v596_v36, %v593_v45  ;;  %v639_v56 = vmul.f32 %v638_v50, %v1675_v29  ;;  %v642_v58 = vmul.f32 %v641_v51, %v1714_v60  ;;  %v646_v61 = vmul.f32 %v645_v15, %v1747_v24  ;;  %s2010_s14 = sld [smem:[#allocation2 + $0x9d]]  ;;  %s2016_s16 = sld [smem:[#allocation2 + $0x6e]] }
  0x7d   : > { %v620_v59 = vadd.f32 %v619_v42, %v616_v48  ;;  %v649_v62 = vstv %s1918_s17  ;;  %v653_v63 = vstv %s1920_s19  ;;  %v634_v3 = vstv %s1925_s20  ;;  %s2021_s17 = sld [smem:[#allocation2 + $0x76]] }
  0x7e   : > { %v600_v0 = vadd.f32 %v599_v39, %v597_v54  ;;  %v643_v4 = vadd.f32 %v642_v58, %v639_v56  ;;  %v650_v2 = vmul.f32 %v649_v62, %v1784_v52  ;;  %v1971_v5 = vmax.f32 %v565_v44, 0.0  ;;  %s2023_s19 = sld [smem:[#allocation2 + $0x7e]] }
  0x7f   : > { %v624_v6 = vadd.f32 %v623_v46, %v620_v59  ;;  %v631_v7 = vmul.f32 %v630_v47, %v1911_v25  ;;  %v657_v8 = vstv %s1930_s21  ;;  %v654_v10 = vmul.f32 %v653_v63, %v1823_v17  ;;  %s2028_s20 = sld [smem:[#allocation2 + $0x86]] }
  0x80   : > { %v647_v9 = vadd.f32 %v646_v61, %v643_v4  ;;  %v661_v12 = vstv %s1933_s22  ;;  %v665_v13 = vstv %s1935_s23  ;;  %v1986_v14 = vmax.f32 %v600_v0, 0.0  ;;  %s2030_s21 = sld [smem:[#allocation2 + $0x8e]]  ;;  %s2042_s23 = sld [smem:[#allocation2 + $0xa5]] }
  0x81   : > { %v628_v16 = vadd.f32 %v627_v55, %v624_v6  ;;  %v658_v18 = vmul.f32 %v657_v8, %v1835_v28  ;;  %v673_v19 = vstv %s1940_s24  ;;  %v676_v22 = vstv %s1944_s25  ;;  %s2038_s22 = sld [smem:[#allocation2 + $0x96]]  ;;  %s2049_s24 = sld [smem:[#allocation2 + $0x67]] }
  0x82   : > { %v651_v20 = vadd.f32 %v650_v2, %v647_v9  ;;  %v674_v21 = vmul.f32 %v673_v19, %v1675_v29  ;;  %v680_v23 = vstv %s1946_s26  ;;  %v677_v49 = vmul.f32 %v676_v22, %v1714_v60  ;;  %s2051_s25 = sld [smem:[#allocation2 + $0x6f]]  ;;  %s2054_s26 = sld [smem:[#allocation2 + $0x9e]] }
  0x83   : > { %v632_v41 = vadd.f32 %v631_v7, %v628_v16  ;;  %v681_v26 = vmul.f32 %v680_v23, %v1747_v24  ;;  %v684_v27 = vstv %s1951_s27  ;;  %v662_v31 = vmul.f32 %v661_v12, %v1871_v53  ;;  %s2060_s27 = sld [smem:[#allocation2 + $0x77]] }
  0x84   : > { %v655_v30 = vadd.f32 %v654_v10, %v651_v20  ;;  %v688_v32 = vstv %s1956_s28  ;;  %v692_v57 = vstv %s1958_s29  ;;  %v666_v1 = vmul.f32 %v665_v13, %v1911_v25  ;;  %s2062_s28 = sld [smem:[#allocation2 + $0x7f]]  ;;  %s2066_s29 = sld [smem:[#allocation2 + $0xa6]] }
  0x85   : > { %v669_v33 = vstv %s1963_s3  ;;  %v678_v11 = vadd.f32 %v677_v49, %v674_v21  ;;  %v685_v34 = vmul.f32 %v684_v27, %v1784_v52  ;;  %v635_v35 = vadd.f32 %v634_v3, %v632_v41  ;;  %s2072_s3 = sld [smem:[#allocation2 + $0x87]] }
  0x86   : > { %v659_v37 = vadd.f32 %v658_v18, %v655_v30  ;;  %v689_v38 = vmul.f32 %v688_v32, %v1823_v17  ;;  %v693_v36 = vmul.f32 %v692_v57, %v1835_v28  ;;  %v696_v40 = vstv %s1967_s4  ;;  %s2074_s4 = sld [smem:[#allocation2 + $0x8f]] }
  0x87   : > { %v682_v39 = vadd.f32 %v681_v26, %v678_v11  ;;  %v700_v42 = vstv %s1969_s5  ;;  %v704_v43 = vstv %s1975_s6  ;;  %v708_v45 = vstv %s1977_s30  ;;  %s2082_s5 = sld [smem:[#allocation2 + $0x97]]  ;;  %s2107_s6 = sld [smem:[#allocation2 + $0xb8]] }
  0x88   : > { %v663_v44 = vadd.f32 %v662_v31, %v659_v37  ;;  %v711_v46 = vstv %s1982_s7  ;;  %v715_v47 = vstv %s1984_s8  ;;  %v709_v50 = vmul.f32 %v708_v45, %v1675_v29  ;;  %s2086_s30 = sld [smem:[#allocation2 + $0x9f]]  ;;  %s2088_s7 = sld [smem:[#allocation2 + $0xa8]] }
  0x89   : > { %v686_v48 = vadd.f32 %v685_v34, %v682_v39  ;;  %v712_v51 = vmul.f32 %v711_v46, %v1714_v60  ;;  %v716_v15 = vmul.f32 %v715_v47, %v1747_v24  ;;  %v719_v55 = vstv %s1990_s10  ;;  %s2095_s8 = sld [smem:[#allocation2 + $0xac]]  ;;  %s2097_s10 = sld [smem:[#allocation2 + $0xb0]] }
  0x8a   : > { %v667_v54 = vadd.f32 %v666_v1, %v663_v44  ;;  %v723_v56 = vstv %s1995_s11  ;;  %v727_v58 = vstv %s1997_s12  ;;  %v697_v61 = vmul.f32 %v696_v40, %v1871_v53  ;;  %s2101_s11 = sld [smem:[#allocation2 + $0xb4]] }
  0x8b   : > { %v690_v59 = vadd.f32 %v689_v38, %v686_v48  ;;  %v713_v62 = vadd.f32 %v712_v51, %v709_v50  ;;  %v720_v63 = vmul.f32 %v719_v55, %v1784_v52  ;;  %v2044_v0 = vmax.f32 %v635_v35, 0.0  ;;  %s2109_s12 = sld [smem:[#allocation2 + $0xbc]] }
  0x8c   : > { %v701_v3 = vmul.f32 %v700_v42, %v1911_v25  ;;  %v724_v4 = vmul.f32 %v723_v56, %v1823_v17  ;;  %v731_v2 = vstv %s2005_s13  ;;  %v670_v6 = vadd.f32 %v669_v33, %v667_v54  ;;  %s2113_s13 = sld [smem:[#allocation2 + $0xa7]] }
  0x8d   : > { %v694_v7 = vadd.f32 %v693_v36, %v690_v59  ;;  %v717_v8 = vadd.f32 %v716_v15, %v713_v62  ;;  %v728_v9 = vmul.f32 %v727_v58, %v1835_v28  ;;  %v732_v10 = vmul.f32 %v731_v2, %v1871_v53 }
  0x8e   : > { %v735_v12 = vstv %s2010_s14  ;;  %v743_v13 = vstv %s2014_s15  ;;  %v746_v16 = vstv %s2016_s16  ;;  %v750_v22 = vstv %s2021_s17  ;;  %s2118_s14 = sld [smem:[#allocation2 + $0xc0]]  ;;  %s2123_s15 = sld [smem:[#allocation2 + $0xa9]] }
  0x8f   : > { %v698_v18 = vadd.f32 %v697_v61, %v694_v7  ;;  %v721_v19 = vadd.f32 %v720_v63, %v717_v8  ;;  %v744_v20 = vmul.f32 %v743_v13, %v1675_v29  ;;  %v747_v21 = vmul.f32 %v746_v16, %v1714_v60  ;;  %s2125_s16 = sld [smem:[#allocation2 + $0xad]]  ;;  %s2130_s17 = sld [smem:[#allocation2 + $0xb1]] }
  0x90   : > { %v754_v23 = vstv %s2023_s19  ;;  %v758_v41 = vstv %s2028_s20  ;;  %v762_v49 = vstv %s2030_s21  ;;  %v751_v31 = vmul.f32 %v750_v22, %v1747_v24  ;;  %s2136_s19 = sld [smem:[#allocation2 + $0xb5]]  ;;  %s2141_s20 = sld [smem:[#allocation2 + $0xb9]] }
  0x91   : > { %v702_v26 = vadd.f32 %v701_v3, %v698_v18  ;;  %v725_v27 = vadd.f32 %v724_v4, %v721_v19  ;;  %v748_v30 = vadd.f32 %v747_v21, %v744_v20  ;;  %v2077_v32 = vmax.f32 %v670_v6, 0.0  ;;  %s2146_s21 = sld [smem:[#allocation2 + $0xbd]] }
  0x92   : > { %v736_v57 = vmul.f32 %v735_v12, %v1911_v25  ;;  %v755_v1 = vmul.f32 %v754_v23, %v1784_v52  ;;  %v766_v33 = vstv %s2038_s22  ;;  %v739_v34 = vstv %s2042_s23  ;;  %s2151_s22 = sld [smem:[#allocation2 + $0xc4]]  ;;  %s2155_s23 = sld [smem:[#allocation2 + $0xc1]] }
  0x93   : > { %v729_v11 = vadd.f32 %v728_v9, %v725_v27  ;;  %v752_v35 = vadd.f32 %v751_v31, %v748_v30  ;;  %v759_v37 = vmul.f32 %v758_v41, %v1823_v17  ;;  %v705_v38 = vadd.f32 %v704_v43, %v702_v26 }
  0x94   : > { %v763_v36 = vmul.f32 %v762_v49, %v1835_v28  ;;  %v778_v39 = vstv %s2049_s24  ;;  %v781_v40 = vstv %s2051_s25  ;;  %v767_v45 = vmul.f32 %v766_v33, %v1871_v53  ;;  %s2157_s24 = sld [smem:[#allocation2 + $0xaa]]  ;;  %s2162_s25 = sld [smem:[#allocation2 + $0xae]] }
  0x95   : > { %v733_v42 = vadd.f32 %v732_v10, %v729_v11  ;;  %v756_v44 = vadd.f32 %v755_v1, %v752_v35  ;;  %v770_v46 = vstv %s2054_s26  ;;  %v779_v43 = vmul.f32 %v778_v39, %v1675_v29  ;;  %s2167_s26 = sld [smem:[#allocation2 + $0xb2]] }
  0x96   : > { %v782_v47 = vmul.f32 %v781_v40, %v1714_v60  ;;  %v785_v48 = vstv %s2060_s27  ;;  %v789_v50 = vstv %s2062_s28  ;;  %v774_v54 = vstv %s2066_s29  ;;  %s2169_s27 = sld [smem:[#allocation2 + $0xb6]]  ;;  %s2174_s28 = sld [smem:[#allocation2 + $0xc5]] }
  0x97   : > { %v737_v51 = vadd.f32 %v736_v57, %v733_v42  ;;  %v760_v15 = vadd.f32 %v759_v37, %v756_v44  ;;  %v786_v55 = vmul.f32 %v785_v48, %v1747_v24  ;;  %v790_v58 = vmul.f32 %v789_v50, %v1784_v52  ;;  %s2180_s29 = sld [smem:[#allocation2 + $0xba]] }
  0x98   : > { %v783_v56 = vadd.f32 %v782_v47, %v779_v43  ;;  %v793_v29 = vstv %s2072_s3  ;;  %v797_v60 = vstv %s2074_s4  ;;  %v2120_v59 = vmax.f32 %v705_v38, 0.0  ;;  %s2182_s3 = sld [smem:[#allocation2 + $0xbe]]  ;;  %s2189_s4 = sld [smem:[#allocation2 + $0xc2]] }
  0x99   : > { %v740_v61 = vadd.f32 %v739_v34, %v737_v51  ;;  %v764_v62 = vadd.f32 %v763_v36, %v760_v15  ;;  %v771_v63 = vmul.f32 %v770_v46, %v1911_v25  ;;  %v794_v52 = vmul.f32 %v793_v29, %v1823_v17 }
  0x9a   : > { %v787_v24 = vadd.f32 %v786_v55, %v783_v56  ;;  %v798_v3 = vmul.f32 %v797_v60, %v1835_v28  ;;  %v801_v4 = vstv %s2082_s5  ;;  %v805_v7 = vstv %s2086_s30  ;;  %s2191_s5 = sld [smem:[#allocation2 + $0xab]]  ;;  %s2197_s30 = sld [smem:[#allocation2 + $0xaf]] }
  0x9b   : > { %v2132_v2 = vmax.f32 %v740_v61, 0.0  ;;  %v768_v6 = vadd.f32 %v767_v45, %v764_v62  ;;  %v813_v8 = vstv %s2088_s7  ;;  %v816_v17 = vstv %s2095_s8  ;;  %s2199_s7 = sld [smem:[#allocation2 + $0xb3]]  ;;  %s2203_s8 = sld [smem:[#allocation2 + $0xc6]] }
  0x9c   : > { %v791_v9 = vadd.f32 %v790_v58, %v787_v24  ;;  %v814_v10 = vmul.f32 %v813_v8, %v1971_v5  ;;  %v820_v12 = vstv %s2097_s10  ;;  %v817_v13 = vmul.f32 %v816_v17, %v1986_v14  ;;  %s2210_s10 = sld [smem:[#allocation2 + $0xb7]] }
  0x9d   : > { %v772_v28 = vadd.f32 %v771_v63, %v768_v6  ;;  %v821_v16 = vmul.f32 %v820_v12, %v2044_v0  ;;  %v824_v18 = vstv %s2101_s11  ;;  %v802_v20 = vmul.f32 %v801_v4, %v1871_v53  ;;  %s2212_s11 = sld [smem:[#allocation2 + $0xbb]] }
  0x9e   : > { %v795_v19 = vadd.f32 %v794_v52, %v791_v9  ;;  %v828_v21 = vstv %s2107_s6  ;;  %v832_v22 = vstv %s2109_s12  ;;  %v809_v41 = vstv %s2113_s13  ;;  %s2220_s6 = sld [smem:[#allocation2 + $0xbf]]  ;;  %s2222_s12 = sld [smem:[#allocation2 + $0xc8]] }
  0x9f   : > { %v775_v23 = vadd.f32 %v774_v54, %v772_v28  ;;  %v818_v49 = vadd.f32 %v817_v13, %v814_v10  ;;  %v825_v26 = vmul.f32 %v824_v18, %v2077_v32  ;;  %v806_v53 = vmul.f32 %v805_v7, %v1911_v25  ;;  %s2224_s13 = sld [smem:[#allocation2 + $0xc9]] }
  0xa0   : > { %v799_v27 = vadd.f32 %v798_v3, %v795_v19  ;;  %v829_v30 = vmul.f32 %v828_v21, %v2120_v59  ;;  %v833_v31 = vmul.f32 %v832_v22, %v2132_v2  ;;  %v836_v1 = vstv %s2118_s14  ;;  %s2228_s14 = sld [smem:[#allocation2 + $0xc3]] }
  0xa1   : > { %v822_v57 = vadd.f32 %v821_v16, %v818_v49  ;;  %v847_v33 = vstv %s2123_s15  ;;  %v850_v11 = vstv %s2125_s16  ;;  %v854_v37 = vstv %s2130_s17  ;;  %s2230_s15 = sld [smem:[#allocation2 + $0xc7]]  ;;  %s2235_s16 = sld [smem:[#allocation2 + $0xca]] }
  0xa2   : > { %v803_v34 = vadd.f32 %v802_v20, %v799_v27  ;;  %v848_v25 = vmul.f32 %v847_v33, %v1971_v5  ;;  %v851_v35 = vmul.f32 %v850_v11, %v1986_v14  ;;  %v2176_v38 = vmax.f32 %v775_v23, 0.0  ;;  %s2244_s17 = sld [smem:[#allocation2 + $0xcb]] }
  0xa3   : > { %v826_v36 = vadd.f32 %v825_v26, %v822_v57  ;;  %v855_v39 = vmul.f32 %v854_v37, %v2044_v0  ;;  %v858_v40 = vstv %s2136_s19  ;;  %v862_v46 = vstv %s2141_s20  ;;  %s1135_s19 = sshll.u32 %s2283_s18, 2 }
  0xa4   : > { %v807_v42 = vadd.f32 %v806_v53, %v803_v34  ;;  %v852_v44 = vadd.f32 %v851_v35, %v848_v25  ;;  %v859_v45 = vmul.f32 %v858_v40, %v2077_v32  ;;  %v866_v47 = vstv %s2146_s21 }
  0xa5   : > { %v830_v43 = vadd.f32 %v829_v30, %v826_v36  ;;  %v840_v50 = vstv %s2151_s22  ;;  %v863_v15 = vmul.f32 %v862_v46, %v2120_v59  ;;  %v837_v54 = vmul.f32 %v836_v1, %v2176_v38  ;;  %s159_s22 = scalar_lea.vmem %s2279_s2, %s1135_s19 }
  0xa6   : > { %v810_v48 = vadd.f32 %v809_v41, %v807_v42  ;;  %v856_v51 = vadd.f32 %v855_v39, %v852_v44  ;;  %v867_v55 = vmul.f32 %v866_v47, %v2132_v2  ;;  %v870_v56 = vstv %s2155_s23 }
  0xa7   : > { %v881_v58 = vstv %s2157_s24  ;;  %v834_v29 = vadd.f32 %v833_v31, %v830_v43  ;;  %v884_v62 = vstv %s2162_s25  ;;  %v888_v52 = vstv %s2167_s26 }
  0xa8   : > { %v860_v60 = vadd.f32 %v859_v45, %v856_v51  ;;  %v882_v61 = vmul.f32 %v881_v58, %v1971_v5  ;;  %v2205_v63 = vmax.f32 %v810_v48, 0.0  ;;  %v885_v24 = vmul.f32 %v884_v62, %v1986_v14 }
  0xa9   : > { %v892_v3 = vstv %s2169_s27  ;;  %v871_v6 = vmul.f32 %v870_v56, %v2176_v38  ;;  %v874_v7 = vstv %s2174_s28  ;;  %v889_v8 = vmul.f32 %v888_v52, %v2044_v0 }
  0xaa   : > { %v864_v4 = vadd.f32 %v863_v15, %v860_v60  ;;  %v886_v9 = vadd.f32 %v885_v24, %v882_v61  ;;  %v893_v10 = vmul.f32 %v892_v3, %v2077_v32  ;;  %v896_v17 = vstv %s2180_s29 }
  0xab   : > { %v900_v12 = vstv %s2182_s3  ;;  %v838_v13 = vadd.f32 %v837_v54, %v834_v29  ;;  %v841_v16 = vmul.f32 %v840_v50, %v2205_v63  ;;  %v897_v19 = vmul.f32 %v896_v17, %v2120_v59 }
  0xac   : > { %v868_v28 = vadd.f32 %v867_v55, %v864_v4  ;;  %v890_v18 = vadd.f32 %v889_v8, %v886_v9  ;;  %v875_v21 = vmul.f32 %v874_v7, %v2205_v63  ;;  %v901_v22 = vmul.f32 %v900_v12, %v2132_v2 }
  0xad   : > { %v904_v23 = vstv %s2189_s4  ;;  %v915_v49 = vstv %s2191_s5  ;;  %v918_v26 = vstv %s2197_s30  ;;  %v922_v27 = vstv %s2199_s7 }
  0xae   : > { %v872_v20 = vadd.f32 %v871_v6, %v868_v28  ;;  %v894_v41 = vadd.f32 %v893_v10, %v890_v18  ;;  %v908_v53 = vstv %s2203_s8  ;;  %v916_v30 = vmul.f32 %v915_v49, %v1971_v5 }
  0xaf   : > { %v919_v31 = vmul.f32 %v918_v26, %v1986_v14  ;;  %v923_v57 = vmul.f32 %v922_v27, %v2044_v0  ;;  %v905_v33 = vmul.f32 %v904_v23, %v2176_v38  ;;  %v926_v11 = vstv %s2210_s10 }
  0xb0   : > { %v898_v1 = vadd.f32 %v897_v19, %v894_v41  ;;  %v930_v34 = vstv %s2212_s11  ;;  %v842_v25 = vadd.f32 %v841_v16, %v838_v13  ;;  %v927_v37 = vmul.f32 %v926_v11, %v2077_v32 }
  0xb1   : > { %v920_v35 = vadd.f32 %v919_v31, %v916_v30  ;;  %v876_v5 = vadd.f32 %v875_v21, %v872_v20  ;;  %v909_v14 = vmul.f32 %v908_v53, %v2205_v63  ;;  %v934_v39 = vstv %s2220_s6 }
  0xb2   : > { %v902_v36 = vadd.f32 %v901_v22, %v898_v1  ;;  %v844_v0 = vstv %s2222_s12  ;;  %v878_v40 = vstv %s2224_s13  ;;  %v931_v44 = vmul.f32 %v930_v34, %v2120_v59 }
  0xb3   : > { %v924_v42 = vadd.f32 %v923_v57, %v920_v35  ;;  %v938_v46 = vstv %s2228_s14  ;;  %v942_v43 = vstv %s2230_s15  ;;  %v949_v47 = vlaneseq }
  0xb4   : > { %v906_v45 = vadd.f32 %v905_v33, %v902_v36  ;;  %v912_v48 = vstv %s2235_s16  ;;  %v935_v51 = vmul.f32 %v934_v39, %v2132_v2  ;;  %v845_v32 = vadd.f32 %v844_v0, %v842_v25 }
  0xb5   : > { %v928_v50 = vadd.f32 %v927_v37, %v924_v42  ;;  %v879_v15 = vadd.f32 %v878_v40, %v876_v5  ;;  %v950_v55 = vshrl.u32 %v949_v47, 7  ;;  %v939_v58 = vmul.f32 %v938_v46, %v2176_v38 }
  0xb6   : > { %v910_v54 = vadd.f32 %v909_v14, %v906_v45  ;;  %v943_v29 = vmul.f32 %v942_v43, %v2205_v63  ;;  %v946_v60 = vstv %s2244_s17 }
  0xb7   : > { %v932_v56 = vadd.f32 %v931_v44, %v928_v50  ;;  %v951_v59 = vsub.s32 0, %v950_v55  ;;  %v955_v62 = vsub.s32 1, %v950_v55  ;;  %v959_v24 = vsub.s32 2, %v950_v55 }
  0xb8   : > { %v913_v61 = vadd.f32 %v912_v48, %v910_v54  ;;  %v963_v3 = vsub.s32 3, %v950_v55 }
  0xb9   : > { %v936_v52 = vadd.f32 %v935_v51, %v932_v56  ;;  %v952_v4 = vrot.slane %v845_v32, %v951_v59  ;;  %v956_v2 = vrot.slane %v845_v32, %v955_v62  ;;  %v960_v6 = vrot.slane %v845_v32, %v959_v24 }
  0xba   : > { %v973_v7 = vrot.slane %v879_v15, %v951_v59  ;;  %v964_v9 = vrot.slane %v845_v32, %v963_v3  ;;  %v977_v10 = vrot.slane %v879_v15, %v955_v62  ;;  %v981_v38 = vrot.slane %v879_v15, %v959_v24 }
  0xbb   : > { %v940_v8 = vadd.f32 %v939_v58, %v936_v52  ;;  %v985_v17 = vrot.slane %v879_v15, %v963_v3  ;;  %v994_v63 = vrot.slane %v913_v61, %v951_v59  ;;  %v998_v12 = vrot.slane %v913_v61, %v955_v62 }
  0xbc   : > { %v1002_v28 = vrot.slane %v913_v61, %v959_v24  ;;  %v1006_v16 = vrot.slane %v913_v61, %v963_v3  ;;  %v1033_v18 = vsel %vm1032_vm0, %v952_v4, %v973_v7  ;;  %v1034_v19 = vsel %vm1032_vm0, %v956_v2, %v977_v10 }
  0xbd   : > { %v944_v13 = vadd.f32 %v943_v29, %v940_v8  ;;  %v1035_v20 = vsel %vm1032_vm0, %v960_v6, %v981_v38  ;;  %v1036_v21 = vsel %vm1032_vm0, %v964_v9, %v985_v17  ;;  %v1038_v23 = vsel %vm1037_vm1, %v1033_v18, %v994_v63 }
  0xbe   : > { %v1039_v41 = vsel %vm1037_vm1, %v1034_v19, %v998_v12  ;;  %v1040_v49 = vsel %vm1037_vm1, %v1035_v20, %v1002_v28  ;;  %v1041_v26 = vsel %vm1037_vm1, %v1036_v21, %v1006_v16 }
  0xbf   : > { %v947_v22 = vadd.f32 %v946_v60, %v944_v13 }
  0xc1   : > { %v1015_v27 = vrot.slane %v947_v22, %v951_v59  ;;  %v1019_v53 = vrot.slane %v947_v22, %v955_v62  ;;  %v1023_v30 = vrot.slane %v947_v22, %v959_v24  ;;  %v1027_v31 = vrot.slane %v947_v22, %v963_v3 }
  0xc3   : > { %v1043_v57 = vsel %vm1042_vm2, %v1038_v23, %v1015_v27  ;;  %v1044_v1 = vsel %vm1042_vm2, %v1039_v41, %v1019_v53  ;;  %v1045_v33 = vsel %vm1042_vm2, %v1040_v49, %v1023_v30  ;;  %v1046_v11 = vsel %vm1042_vm2, %v1041_v26, %v1027_v31 }
  0xc4   : > { %v1051_v34 = vcombine.low %v1043_v57, %v1044_v1  ;;  %v1052_v25 = vcombine.low %v1045_v33, %v1046_v11 }
  0xc6   : > { %1055 = vst [vmem:[%s159_s22] sm:$0xff] %v1051_v34  ;;  %1056 = vst [vmem:[%s159_s22 + $0x8] sm:$0xff] %v1052_v25 }
  0xc7 PF: > { %s13_s9 = sadd.s32 1, %s1386_s9  }
  0xc8   : > { %p10_p1 = scmp.ge.s32.totalorder %s13_s9, 4  }
  0xca   :  { %12 = sbr.rel (!%p10_p1) target bundleno = 1 (0x1), region = 64 }
  0xd1   :  { %1079 = vsyncpa [#allocation3], 1 }
  0xd2   :  { %1081 = vsyncpa [#allocation3 + $0x1], 1 }

</bundles_post_ra>
